<compile_context>
chip_gen: v7x
topology: tpu7x:2x2x1
jax: 0.10.0
libtpu: 0.0.40
codegen_flags: <defaults>
</compile_context>

<pallas_src>
import functools

import jax
import jax.numpy as jnp
from jax.experimental import pallas as pl
from jax.experimental.pallas import tpu as pltpu


def _round_up(x, m):
    return (x + m - 1) // m * m


def _hattn_general_kernel(h_ref, enc_ref, w_ref, b_ref, out_ref, *, valid_len):
    # h_ref   : (B_blk, D)         hidden vectors for this batch block
    # enc_ref : (B_blk, S_pad, D)  encoder states (seq padded to lane width)
    # w_ref   : (D, D)             torch.nn.Linear weight (out_features, in_features)
    # b_ref   : (1, D)             Linear bias
    # out_ref : (B_blk, S_pad)     softmaxed attention energies (lane-dense store)
    h = h_ref[...]                                     # [B_blk, D]
    w = w_ref[...]                                     # [D, D]
    bias = b_ref[...]                                  # [1, D]
    enc = enc_ref[...]                                 # [B_blk, S_pad, D]

    # Algebraic rewrite of energy = h · (enc @ W.T + bias):
    #   v = h @ W        (one tiny matmul per block instead of S projections)
    #   c = h · bias     (per-row constant; cancels in softmax, kept for fidelity)
    #   energy[b, s] = enc[b, s, :] · v[b, :] + c[b]
    v = jnp.dot(h, w, preferred_element_type=jnp.float32)                 # [B_blk, D]
    c = jnp.sum(h.astype(jnp.float32) * bias, axis=-1, keepdims=True)     # [B_blk, 1]

    energy = jnp.sum(enc.astype(jnp.float32) * v[:, None, :], axis=-1) + c  # [B_blk, S_pad]

    # Mask out sequence padding (only present when S was not 128-aligned).
    s_pad = energy.shape[-1]
    if valid_len < s_pad:
        col = jax.lax.broadcasted_iota(jnp.int32, energy.shape, 1)
        energy = jnp.where(col < valid_len, energy, -jnp.inf)

    # Softmax over the (real) sequence positions; padded lanes come out as 0.
    m = jnp.max(energy, axis=-1, keepdims=True)
    e = jnp.exp(energy - m)
    denom = jnp.sum(e, axis=-1, keepdims=True)
    p = e * pl.reciprocal(denom, approx=True)

    out_ref[...] = p.astype(out_ref.dtype)


def hattn_general(hidden, encoder_hiddens, weight, bias):
    """hidden: [B, D], encoder_hiddens: [B, S, D], weight: [D, D], bias: [D]."""
    B, D = hidden.shape
    Be, S, De = encoder_hiddens.shape
    assert Be == B, "batch mismatch"
    assert De == D, "h_general requires en_hidden_size == effective de_hidden_size"

    # Lane-dense output / uniform sequence tile.
    s_pad = _round_up(S, 128)
    # Batch block: sublane-aligned, capped so large batches still get several
    # grid steps (sharded across TensorCores via "parallel").
    b_blk = min(_round_up(B, 8), 64)
    b_pad = _round_up(B, b_blk)

    h_p = hidden
    enc_p = encoder_hiddens
    if b_pad != B:
        h_p = jnp.pad(h_p, ((0, b_pad - B), (0, 0)))
    if b_pad != B or s_pad != S:
        enc_p = jnp.pad(enc_p, ((0, b_pad - B), (0, s_pad - S), (0, 0)))
    bias_2d = bias.reshape(1, D)

    kernel = functools.partial(_hattn_general_kernel, valid_len=S)

    out = pl.pallas_call(
        kernel,
        out_shape=jax.ShapeDtypeStruct((b_pad, s_pad), hidden.dtype),
        grid_spec=pltpu.PrefetchScalarGridSpec(
            num_scalar_prefetch=0,
            grid=(b_pad // b_blk,),
            in_specs=[
                pl.BlockSpec((b_blk, D), lambda b: (b, 0)),        # hidden
                pl.BlockSpec((b_blk, s_pad, D), lambda b: (b, 0, 0)),  # encoder states
                pl.BlockSpec((D, D), lambda b: (0, 0)),            # Linear weight
                pl.BlockSpec((1, D), lambda b: (0, 0)),            # Linear bias
            ],
            out_specs=pl.BlockSpec((b_blk, s_pad), lambda b: (b, 0)),
        ),
        compiler_params=pltpu.CompilerParams(
            dimension_semantics=("parallel",),
            vmem_limit_bytes=32 * 1024 * 1024,
        ),
    )(h_p, enc_p, weight, bias_2d)

    return out[:B, :S]


def hattn_general_reference(hidden, encoder_hiddens, weight, bias):
    proj = jnp.einsum("bsd,od->bso", encoder_hiddens, weight) + bias   # nn.Linear
    energy = jnp.einsum("bd,bsd->bs", hidden, proj)
    return jax.nn.softmax(energy, axis=-1)


if __name__ == "__main__":
    # Module config: method='h_general', en_hidden_size=32, de_hidden_size=16,
    # n_en_layers=1, n_de_layers=2, bidirectional=False
    # -> effective de_hidden_size = 16 * 2 * 1 = 32
    B, S, D = 2, 8, 32

    key = jax.random.PRNGKey(0)
    k_h, k_e, k_w, k_b = jax.random.split(key, 4)

    hidden = jax.random.normal(k_h, (B, D), dtype=jnp.float32)
    encoder_hiddens = jax.random.normal(k_e, (B, S, D), dtype=jnp.float32)

    # Deterministic Linear(D, D) parameters (PyTorch-style uniform init bound).
    bound = 1.0 / jnp.sqrt(jnp.float32(D))
    weight = jax.random.uniform(k_w, (D, D), minval=-bound, maxval=bound,
                                dtype=jnp.float32)
    bias = jax.random.uniform(k_b, (D,), minval=-bound, maxval=bound,
                              dtype=jnp.float32)

    out = hattn_general(hidden, encoder_hiddens, weight, bias)
    out = jax.block_until_ready(out)

    ref = hattn_general_reference(hidden, encoder_hiddens, weight, bias)
    assert out.shape == (B, S)
    # Slightly loose tolerance: approx (EUP) reciprocal in the softmax denom.
    assert jnp.allclose(out, ref, atol=5e-3, rtol=5e-3), "mismatch vs reference"

    print("KERNEL_OK")
</pallas_src>

<mosaic_0001>
module attributes {stable_mosaic.version = 11 : i64} {
  func.func @_hattn_general_kernel(%arg0: i32, %arg1: memref<8x32xf32, #tpu.memory_space<vmem>>, %arg2: memref<8x128x32xf32, #tpu.memory_space<vmem>>, %arg3: memref<32x32xf32, #tpu.memory_space<vmem>>, %arg4: memref<1x32xf32, #tpu.memory_space<vmem>>, %arg5: memref<8x128xf32, #tpu.memory_space<vmem>>) attributes {dimension_semantics = [#tpu.dimension_semantics<parallel>], iteration_bounds = array<i64: 1>, scalar_prefetch = 0 : i64, scratch_operands = 0 : i64, tpu.core_type = #tpu.core_type<tc>, window_params = [{transform_indices = @transform_0, window_bounds = array<i64: 8, 32>}, {transform_indices = @transform_1, window_bounds = array<i64: 8, 128, 32>}, {pipeline_mode = #tpu.pipeline_mode<synchronous>, transform_indices = @transform_2, window_bounds = array<i64: 32, 32>}, {pipeline_mode = #tpu.pipeline_mode<synchronous>, transform_indices = @transform_3, window_bounds = array<i64: 1, 32>}, {transform_indices = @transform_4, window_bounds = array<i64: 8, 128>}]} {
    %c0 = arith.constant 0 : index
    %c0_0 = arith.constant 0 : index
    %0 = vector.load %arg1[%c0, %c0_0] : memref<8x32xf32, #tpu.memory_space<vmem>>, vector<8x32xf32>
    %c0_1 = arith.constant 0 : index
    %c0_2 = arith.constant 0 : index
    %1 = vector.load %arg3[%c0_1, %c0_2] : memref<32x32xf32, #tpu.memory_space<vmem>>, vector<32x32xf32>
    %c0_3 = arith.constant 0 : index
    %c0_4 = arith.constant 0 : index
    %2 = vector.load %arg4[%c0_3, %c0_4] : memref<1x32xf32, #tpu.memory_space<vmem>>, vector<1x32xf32>
    %c0_5 = arith.constant 0 : index
    %c0_6 = arith.constant 0 : index
    %c0_7 = arith.constant 0 : index
    %3 = vector.load %arg2[%c0_5, %c0_6, %c0_7] : memref<8x128x32xf32, #tpu.memory_space<vmem>>, vector<8x128x32xf32>
    %cst = arith.constant dense<0.000000e+00> : vector<8x32xf32>
    %4 = tpu.matmul %0, %1, %cst {dimension_numbers = #tpu.dot_dimension_numbers<[1], [0], [0], [1], [0, 0, 1, 1], [], []>} : vector<8x32xf32>, vector<32x32xf32>, vector<8x32xf32> -> vector<8x32xf32>
    %5 = vector.broadcast %2 : vector<1x32xf32> to vector<8x32xf32>
    %6 = arith.mulf %0, %5 : vector<8x32xf32>
    %cst_8 = arith.constant dense<0.000000e+00> : vector<8xf32>
    %7 = vector.multi_reduction <add>, %6, %cst_8 [1] : vector<8x32xf32> to vector<8xf32>
    %8 = vector.shape_cast %7 : vector<8xf32> to vector<8x1xf32>
    %9 = vector.shape_cast %4 : vector<8x32xf32> to vector<8x1x32xf32>
    %10 = vector.broadcast %9 : vector<8x1x32xf32> to vector<8x128x32xf32>
    %11 = arith.mulf %3, %10 : vector<8x128x32xf32>
    %cst_9 = arith.constant dense<0.000000e+00> : vector<8x128xf32>
    %12 = vector.multi_reduction <add>, %11, %cst_9 [2] : vector<8x128x32xf32> to vector<8x128xf32>
    %13 = vector.broadcast %8 : vector<8x1xf32> to vector<8x128xf32>
    %14 = arith.addf %12, %13 : vector<8x128xf32>
    %15 = tpu.iota {dimensions = array<i32: 1>} : vector<8x128xi32>
    %c8_i32 = arith.constant 8 : i32
    %16 = vector.broadcast %c8_i32 : i32 to vector<8x128xi32>
    %17 = arith.cmpi slt, %15, %16 : vector<8x128xi32>
    %cst_10 = arith.constant 0xFF800000 : f32
    %18 = vector.broadcast %cst_10 : f32 to vector<8x128xf32>
    %19 = arith.select %17, %14, %18 : vector<8x128xi1>, vector<8x128xf32>
    %cst_11 = arith.constant dense<0xFF800000> : vector<8xf32>
    %20 = vector.multi_reduction <maximumf>, %19, %cst_11 [1] : vector<8x128xf32> to vector<8xf32>
    %21 = vector.shape_cast %20 : vector<8xf32> to vector<8x1xf32>
    %22 = vector.broadcast %21 : vector<8x1xf32> to vector<8x128xf32>
    %23 = arith.subf %19, %22 : vector<8x128xf32>
    %24 = math.exp %23 : vector<8x128xf32>
    %cst_12 = arith.constant dense<0.000000e+00> : vector<8xf32>
    %25 = vector.multi_reduction <add>, %24, %cst_12 [1] : vector<8x128xf32> to vector<8xf32>
    %26 = vector.shape_cast %25 : vector<8xf32> to vector<8x1xf32>
    %27 = tpu.reciprocal %26 {approx = true} : vector<8x1xf32> -> vector<8x1xf32>
    %28 = vector.broadcast %27 : vector<8x1xf32> to vector<8x128xf32>
    %29 = arith.mulf %24, %28 : vector<8x128xf32>
    %c0_13 = arith.constant 0 : index
    %c0_14 = arith.constant 0 : index
    %30 = vector.load %arg5[%c0_13, %c0_14] : memref<8x128xf32, #tpu.memory_space<vmem>>, vector<8x128xf32>
    tpu.vector_store %arg5[%c0_13, %c0_14], %29 {strides = array<i32>} : memref<8x128xf32, #tpu.memory_space<vmem>>, vector<8x128xf32>,
    return
  }
  func.func @transform_0(%arg0: i32) -> (i32, i32) {
    %c0_i32 = arith.constant 0 : i32
    %c0_i32_0 = arith.constant 0 : i32
    return %arg0, %c0_i32 : i32, i32
  }
  func.func @transform_1(%arg0: i32) -> (i32, i32, i32) {
    %c0_i32 = arith.constant 0 : i32
    %c0_i32_0 = arith.constant 0 : i32
    %c0_i32_1 = arith.constant 0 : i32
    return %arg0, %c0_i32, %c0_i32_0 : i32, i32, i32
  }
  func.func @transform_2(%arg0: i32) -> (i32, i32) {
    %c0_i32 = arith.constant 0 : i32
    %c0_i32_0 = arith.constant 0 : i32
    %c0_i32_1 = arith.constant 0 : i32
    return %c0_i32, %c0_i32_0 : i32, i32
  }
  func.func @transform_3(%arg0: i32) -> (i32, i32) {
    %c0_i32 = arith.constant 0 : i32
    %c0_i32_0 = arith.constant 0 : i32
    %c0_i32_1 = arith.constant 0 : i32
    return %c0_i32, %c0_i32_0 : i32, i32
  }
  func.func @transform_4(%arg0: i32) -> (i32, i32) {
    %c0_i32 = arith.constant 0 : i32
    %c0_i32_0 = arith.constant 0 : i32
    return %arg0, %c0_i32 : i32, i32
  }
}

</mosaic_0001>

<bundles_post_ra>
// kernel: tpu_custom_call.1
= control target key start
LH: loop header
LB: loop body
LE: loop exit
PB: predicated region body
PF: predicated region fallthrough
CT: control target
= control target key end

     0   :  { %v2284_v3 = vmov 0.0|0.0   ;;  %vm2285_vm0 = vmmov 0   ;;  %v2286_v6 = vmov 0.0   ;;  %s4086_s0 = inlined_call_operand.vmem [shape: f32[8,32], index: 0, kind: input, shape index: {}]   ;;  %s4087_s1 = inlined_call_operand.vmem [shape: f32[8,128,32], index: 1, kind: input, shape index: {}]   ;;  %s4088_s2 = inlined_call_operand.vmem [shape: f32[32,32], index: 2, kind: input, shape index: {}]   ;;  %s4089_s3 = inlined_call_operand.vmem [shape: f32[1,32], index: 3, kind: input, shape index: {}]   ;;  %s4090_s4 = inlined_call_operand.hbm [shape: f32[8,128], index: 4, kind: output, shape index: {}]  }
   0x1   :  { %v19_v0 = vld [vmem:[%s4088_s2] sm:$0xff]  ;;  %v20_v1 = vld [vmem:[%s4088_s2 + $0x8] sm:$0xff]  ;;  %v21_v2 = vld [vmem:[%s4088_s2 + $0x10] sm:$0xff]  ;;  %2242 = vmatprep.subr.bf16.mxu0 %v2284_v3  ;;  %2239 = vmatprep.mubr.msk.f32.mxu0 %vm2285_vm0, %v2286_v6 }
   0x2   :  { %v2243_v4 = vpack.c.bf16 %v20_v1, %v19_v0  ;;  %v22_v5 = vld [vmem:[%s4088_s2 + $0x18] sm:$0xff] }
   0x3   :  { %9 = vsyncpa [#allocation3], 0  ;;  %v2246_v7 = vpack.c.bf16 %v22_v5, %v21_v2  ;;  %v18_v8 = vld [vmem:[%s4086_s0] sm:$0xff]  ;;  %vm152_vm1 = vcmask 261120   ;;  %v2287_v12 = vmov 1966171168   ;;  %v4091_v14 = vlaneseq }
   0x4   :  { %2244 = vmatpush3.bf16.msra.mxu0 %v2243_v4  ;;  %v2225_v9 = vld [vmem:[%s4089_s3] ss:$0 sm:$0xff]  ;;  %v239_v13 = vunpack.c.l.s4 %v2287_v12  ;;  %v25_v30 = vld [vmem:[%s4087_s1 + $0x8] sm:$0xff]  ;;  %v26_v36 = vld [vmem:[%s4087_s1 + $0x10] sm:$0xff]  ;;  %vm1531_vm2 = vcmask 130112   ;;  %vm1538_vm3 = vcmask 195712  }
   0x5   :  { %2245 = vmatprep.subr.bf16.mxu0 %v2284_v3  ;;  %v232_v10 = vmul.f32 %v2225_v9, %v18_v8  ;;  %v2336_v16 = vshrl.u32 %v4091_v14, 7  ;;  %v24_v31 = vld [vmem:[%s4087_s1] sm:$0xff]  ;;  %v27_v37 = vld [vmem:[%s4087_s1 + $0x18] sm:$0xff]  ;;  %v29_v52 = vld [vmem:[%s4087_s1 + $0x28] sm:$0xff]  ;;  %vm1545_vm4 = vcmask 261312   ;;  %vm1552_vm5 = vcmask 326912  }
   0x6   :  { %v240_v15 = vunpack.c.0.s8 %v239_v13  ;;  %v28_v51 = vld [vmem:[%s4087_s1 + $0x20] sm:$0xff]  ;;  %v30_v57 = vld [vmem:[%s4087_s1 + $0x30] sm:$0xff]  ;;  %v31_v58 = vld [vmem:[%s4087_s1 + $0x38] sm:$0xff]  ;;  %vm1559_vm6 = vcmask 392512   ;;  %vm1566_vm7 = vcmask 458112   ;;  %vm1573_vm8 = vcmask 523712  }
   0x7   :  { %v233_v11 = vsel %vm152_vm1, %v232_v10, 0.0  ;;  %v2340_v22 = vsub.s32 0, %v2336_v16  ;;  %v32_v63 = vld [vmem:[%s4087_s1 + $0x40] sm:$0xff]  ;;  %v33_v0 = vld [vmem:[%s4087_s1 + $0x48] sm:$0xff]  ;;  %v34_v5 = vld [vmem:[%s4087_s1 + $0x50] sm:$0xff]  ;;  %vm1580_vm9 = vcmask 589312  }
   0x8   :  { %2247 = vmatpush3.bf16.msra.mxu0 %v2246_v7  ;;  %234 = vadd.xlane.f32.xlu0 %v233_v11  ;;  %v243_v17 = vsub.s32 %v240_v15, %v2336_v16  ;;  %v35_v6 = vld [vmem:[%s4087_s1 + $0x58] sm:$0xff]  ;;  %v36_v11 = vld [vmem:[%s4087_s1 + $0x60] sm:$0xff]  ;;  %v37_v12 = vld [vmem:[%s4087_s1 + $0x68] sm:$0xff]  ;;  %vm1587_vm10 = vcmask 654912   ;;  %vm1594_vm11 = vcmask 720512   ;;  %vm4093_vm12 = vcmask 786112  }
   0x9   :  { %vm4092_vm13 = vcmask 851712   ;;  %vm1615_vm14 = vcmask 917312   ;;  %vm1622_vm15 = vcmask 982912   ;;  %vm1629_vm0 = vcmask 1048512  }
   0xb   :  { %2240 = vmatmul.mubr.msk.f32.vlgmr.msra.gmra.mrb[0].mxu0 %vm152_vm1, %v18_v8 }
  0xde   :  { %v222_v18 = vpop.f32.mrb[0].mxu0 }
  0xdf   :  { %v237_v19 = vcombine.high %v222_v18, %v222_v18  ;;  %v244_v20 = vrot.slane %v222_v18, %v243_v17  ;;  %v2241_v21 = vpop.f32.mrb[1].mxu0 }
  0xe1   :  { %v251_v23 = vrot.slane %v237_v19, %v243_v17  ;;  %v252_v24 = vcombine.high %v244_v20, %v244_v20  ;;  %v260_v25 = vrot.slane %v244_v20, %v243_v17  ;;  %v38_v19 = vld [vmem:[%s4087_s1 + $0x70] sm:$0xff]  ;;  %v39_v20 = vld [vmem:[%s4087_s1 + $0x78] sm:$0xff] }
  0xe3   :  { %v253_v26 = vcombine.high %v251_v23, %v251_v23  ;;  %v267_v27 = vrot.slane %v251_v23, %v243_v17  ;;  %v2342_v28 = vrot.slane %v252_v24, %v243_v17  ;;  %v282_v29 = vcombine.high %v260_v25, %v260_v25 }
  0xe4   :  { %v2351_v32 = vrot.slane %v260_v25, %v2340_v22 }
  0xe5   :  { %v281_v33 = vrot.slane %v253_v26, %v243_v17  ;;  %v283_v34 = vcombine.high %v267_v27, %v267_v27  ;;  %v284_v35 = vcombine.high %v2342_v28, %v2342_v28  ;;  %v2362_v38 = vrot.slane %v282_v29, %v2340_v22  ;;  %v40_v29 = vld [vmem:[%s4087_s1 + $0x80] sm:$0xff] }
  0xe6   :  { %v2365_v39 = vrot.slane %v267_v27, %v2340_v22  ;;  %v327_v40 = vmul.f32 %v2351_v32, %v25_v30  ;;  %v326_v41 = vmul.f32 %v2351_v32, %v24_v31  ;;  %v328_v48 = vmul.f32 %v2351_v32, %v26_v36  ;;  %v41_v27 = vld [vmem:[%s4087_s1 + $0x88] sm:$0xff] }
  0xe7   :  { %v285_v42 = vcombine.high %v281_v33, %v281_v33  ;;  %v2370_v43 = vrot.slane %v284_v35, %v2340_v22  ;;  %v2373_v44 = vrot.slane %v281_v33, %v2340_v22  ;;  %v2376_v45 = vrot.slane %v283_v34, %v2340_v22  ;;  %v42_v34 = vld [vmem:[%s4087_s1 + $0x90] sm:$0xff] }
  0xe8   :  { %v457_v46 = vsel %vm152_vm1, %v327_v40, 0.0  ;;  %v454_v47 = vsel %vm152_vm1, %v326_v41, 0.0  ;;  %v329_v49 = vmul.f32 %v2351_v32, %v27_v37  ;;  %v460_v53 = vsel %vm152_vm1, %v328_v48, 0.0  ;;  %v45_v41 = vld [vmem:[%s4087_s1 + $0xa8] sm:$0xff] }
  0xe9   :  { %v2383_v50 = vrot.slane %v285_v42, %v2340_v22  ;;  %458 = vadd.xlane.f32.xlu1 %v457_v46  ;;  %455 = vadd.xlane.f32.xlu0 %v454_v47  ;;  %v330_v55 = vmul.f32 %v2351_v32, %v28_v51  ;;  %v331_v56 = vmul.f32 %v2351_v32, %v29_v52  ;;  %v44_v42 = vld [vmem:[%s4087_s1 + $0xa0] sm:$0xff]  ;;  %v47_v51 = vld [vmem:[%s4087_s1 + $0xb8] sm:$0xff]  ;;  %v46_v52 = vld [vmem:[%s4087_s1 + $0xb0] sm:$0xff] }
  0xea   :  { %v463_v54 = vsel %vm152_vm1, %v329_v49, 0.0  ;;  %v332_v61 = vmul.f32 %v2351_v32, %v30_v57  ;;  %v333_v62 = vmul.f32 %v2351_v32, %v31_v58  ;;  %v334_v3 = vmul.f32 %v2351_v32, %v32_v63  ;;  %v49_v57 = vld [vmem:[%s4087_s1 + $0xc8] sm:$0xff]  ;;  %v48_v58 = vld [vmem:[%s4087_s1 + $0xc0] sm:$0xff]  ;;  %v51_v63 = vld [vmem:[%s4087_s1 + $0xd8] sm:$0xff] }
  0xeb   :  { %v466_v59 = vsel %vm152_vm1, %v330_v55, 0.0  ;;  %v469_v60 = vsel %vm152_vm1, %v331_v56, 0.0  ;;  %v335_v4 = vmul.f32 %v2351_v32, %v33_v0  ;;  %v336_v9 = vmul.f32 %v2351_v32, %v34_v5  ;;  %v50_v0 = vld [vmem:[%s4087_s1 + $0xd0] sm:$0xff]  ;;  %v53_v5 = vld [vmem:[%s4087_s1 + $0xe8] sm:$0xff] }
  0xec   :  { %v472_v1 = vsel %vm152_vm1, %v332_v61, 0.0  ;;  %v475_v2 = vsel %vm152_vm1, %v333_v62, 0.0  ;;  %v478_v7 = vsel %vm152_vm1, %v334_v3, 0.0  ;;  %v337_v10 = vmul.f32 %v2351_v32, %v35_v6  ;;  %v52_v6 = vld [vmem:[%s4087_s1 + $0xe0] sm:$0xff] }
  0xed   :  { %461 = vadd.xlane.f32.xlu1 %v460_v53  ;;  %464 = vadd.xlane.f32.xlu0 %v463_v54  ;;  %v481_v8 = vsel %vm152_vm1, %v335_v4, 0.0  ;;  %v484_v13 = vsel %vm152_vm1, %v336_v9, 0.0  ;;  %v338_v17 = vmul.f32 %v2351_v32, %v36_v11  ;;  %v339_v18 = vmul.f32 %v2351_v32, %v37_v12  ;;  %v55_v11 = vld [vmem:[%s4087_s1 + $0xf8] sm:$0xff]  ;;  %v54_v12 = vld [vmem:[%s4087_s1 + $0xf0] sm:$0xff] }
  0xee   :  { %v487_v15 = vsel %vm152_vm1, %v337_v10, 0.0  ;;  %v2443_v21 = vrot.slane %v2342_v28, %v2340_v22  ;;  %v340_v25 = vmul.f32 %v2351_v32, %v38_v19  ;;  %v341_v26 = vmul.f32 %v2351_v32, %v39_v20  ;;  %v43_v32 = vld [vmem:[%s4087_s1 + $0x98] sm:$0xff]  ;;  %v57_v19 = vld [vmem:[%s4087_s1 + $0x108] sm:$0xff]  ;;  %v56_v20 = vld [vmem:[%s4087_s1 + $0x100] sm:$0xff] }
  0xef   :  { %v490_v23 = vsel %vm152_vm1, %v338_v17, 0.0  ;;  %v493_v24 = vsel %vm152_vm1, %v339_v18, 0.0 }
  0xf0   :  { %v496_v28 = vsel %vm152_vm1, %v340_v25, 0.0  ;;  %v499_v30 = vsel %vm152_vm1, %v341_v26, 0.0  ;;  %v343_v31 = vmul.f32 %v2443_v21, %v41_v27  ;;  %v342_v33 = vmul.f32 %v2443_v21, %v40_v29  ;;  %v58_v27 = vld [vmem:[%s4087_s1 + $0x110] sm:$0xff] }
  0xf1   :  { %467 = vadd.xlane.f32.xlu1 %v466_v59  ;;  %470 = vadd.xlane.f32.xlu0 %v469_v60  ;;  %v345_v37 = vmul.f32 %v2443_v21, %v43_v32  ;;  %v344_v40 = vmul.f32 %v2443_v21, %v42_v34  ;;  %v347_v48 = vmul.f32 %v2443_v21, %v45_v41  ;;  %v60_v32 = vld [vmem:[%s4087_s1 + $0x120] sm:$0xff]  ;;  %v62_v41 = vld [vmem:[%s4087_s1 + $0x130] sm:$0xff] }
  0xf2   :  { %v505_v35 = vsel %vm152_vm1, %v343_v31, 0.0  ;;  %v502_v36 = vsel %vm152_vm1, %v342_v33, 0.0  ;;  %v346_v49 = vmul.f32 %v2443_v21, %v44_v42  ;;  %v349_v55 = vmul.f32 %v2443_v21, %v47_v51  ;;  %v61_v33 = vld [vmem:[%s4087_s1 + $0x128] sm:$0xff]  ;;  %v64_v51 = vld [vmem:[%s4087_s1 + $0x140] sm:$0xff] }
  0xf3   :  { %v511_v46 = vsel %vm152_vm1, %v345_v37, 0.0  ;;  %v508_v47 = vsel %vm152_vm1, %v344_v40, 0.0  ;;  %v517_v53 = vsel %vm152_vm1, %v347_v48, 0.0  ;;  %v348_v56 = vmul.f32 %v2443_v21, %v46_v52  ;;  %v63_v40 = vld [vmem:[%s4087_s1 + $0x138] sm:$0xff] }
  0xf4   :  { %v514_v54 = vsel %vm152_vm1, %v346_v49, 0.0  ;;  %v523_v59 = vsel %vm152_vm1, %v349_v55, 0.0  ;;  %v351_v61 = vmul.f32 %v2443_v21, %v49_v57  ;;  %v350_v62 = vmul.f32 %v2443_v21, %v48_v58  ;;  %v65_v49 = vld [vmem:[%s4087_s1 + $0x148] sm:$0xff]  ;;  %v66_v57 = vld [vmem:[%s4087_s1 + $0x150] sm:$0xff] }
  0xf5   :  { %473 = vadd.xlane.f32.xlu1 %v472_v1  ;;  %476 = vadd.xlane.f32.xlu0 %v475_v2  ;;  %v520_v60 = vsel %vm152_vm1, %v348_v56, 0.0  ;;  %v353_v3 = vmul.f32 %v2443_v21, %v51_v63  ;;  %v352_v4 = vmul.f32 %v2443_v21, %v50_v0  ;;  %v355_v9 = vmul.f32 %v2443_v21, %v53_v5  ;;  %v67_v56 = vld [vmem:[%s4087_s1 + $0x158] sm:$0xff]  ;;  %v68_v63 = vld [vmem:[%s4087_s1 + $0x160] sm:$0xff]  ;;  %v70_v5 = vld [vmem:[%s4087_s1 + $0x170] sm:$0xff] }
  0xf6   :  { %v529_v1 = vsel %vm152_vm1, %v351_v61, 0.0  ;;  %v526_v2 = vsel %vm152_vm1, %v350_v62, 0.0  ;;  %v354_v10 = vmul.f32 %v2443_v21, %v52_v6  ;;  %v357_v17 = vmul.f32 %v2443_v21, %v55_v11  ;;  %v69_v62 = vld [vmem:[%s4087_s1 + $0x168] sm:$0xff]  ;;  %v88_v11 = vld [vmem:[%s4087_s1 + $0x200] sm:$0xff] }
  0xf7   :  { %v356_v18 = vmul.f32 %v2443_v21, %v54_v12  ;;  %v359_v25 = vmul.f32 %v2362_v38, %v57_v19  ;;  %v358_v26 = vmul.f32 %v2362_v38, %v56_v20  ;;  %v59_v21 = vld [vmem:[%s4087_s1 + $0x118] sm:$0xff]  ;;  %v360_v31 = vmul.f32 %v2362_v38, %v58_v27 }
  0xf8   :  { %v362_v37 = vmul.f32 %v2362_v38, %v60_v32  ;;  %v364_v48 = vmul.f32 %v2362_v38, %v62_v41  ;;  %v366_v55 = vmul.f32 %v2362_v38, %v64_v51  ;;  %v368_v61 = vmul.f32 %v2362_v38, %v66_v57 }
  0xf9   :  { %479 = vadd.xlane.f32.xlu1 %v478_v7  ;;  %482 = vadd.xlane.f32.xlu0 %v481_v8  ;;  %v535_v7 = vsel %vm152_vm1, %v353_v3, 0.0  ;;  %v532_v8 = vsel %vm152_vm1, %v352_v4, 0.0  ;;  %v553_v29 = vsel %vm152_vm1, %v359_v25, 0.0  ;;  %v370_v3 = vmul.f32 %v2362_v38, %v68_v63  ;;  %v71_v4 = vld [vmem:[%s4087_s1 + $0x178] sm:$0xff]  ;;  %v93_v25 = vld [vmem:[%s4087_s1 + $0x228] sm:$0xff] }
  0xfd   :  { %485 = vadd.xlane.f32.xlu1 %v484_v13  ;;  %488 = vadd.xlane.f32.xlu0 %v487_v15  ;;  %v541_v13 = vsel %vm152_vm1, %v355_v9, 0.0  ;;  %v538_v15 = vsel %vm152_vm1, %v354_v10, 0.0  ;;  %v372_v9 = vmul.f32 %v2362_v38, %v70_v5  ;;  %v89_v10 = vld [vmem:[%s4087_s1 + $0x208] sm:$0xff] }
 0x101   :  { %491 = vadd.xlane.f32.xlu1 %v490_v23  ;;  %494 = vadd.xlane.f32.xlu0 %v493_v24  ;;  %v547_v23 = vsel %vm152_vm1, %v357_v17, 0.0  ;;  %v544_v24 = vsel %vm152_vm1, %v356_v18, 0.0  ;;  %v390_v17 = vmul.f32 %v2365_v39, %v88_v11  ;;  %v90_v18 = vld [vmem:[%s4087_s1 + $0x210] sm:$0xff] }
 0x103   :  { %v646_v20 = vsel %vm152_vm1, %v390_v17, 0.0 }
 0x105   :  { %497 = vadd.xlane.f32.xlu1 %v496_v28  ;;  %500 = vadd.xlane.f32.xlu0 %v499_v30  ;;  %v550_v28 = vsel %vm152_vm1, %v358_v26, 0.0  ;;  %v361_v30 = vmul.f32 %v2362_v38, %v59_v21  ;;  %v92_v26 = vld [vmem:[%s4087_s1 + $0x220] sm:$0xff] }
 0x107   :  { %v559_v34 = vsel %vm152_vm1, %v361_v30, 0.0  ;;  %v95_v30 = vld [vmem:[%s4087_s1 + $0x238] sm:$0xff] }
 0x109   :  { %506 = vadd.xlane.f32.xlu0 %v505_v35  ;;  %503 = vadd.xlane.f32.xlu1 %v502_v36  ;;  %v556_v35 = vsel %vm152_vm1, %v360_v31, 0.0  ;;  %v363_v36 = vmul.f32 %v2362_v38, %v61_v33  ;;  %v94_v31 = vld [vmem:[%s4087_s1 + $0x230] sm:$0xff] }
 0x10b   :  { %v565_v42 = vsel %vm152_vm1, %v363_v36, 0.0  ;;  %v97_v36 = vld [vmem:[%s4087_s1 + $0x248] sm:$0xff] }
 0x10d   :  { %512 = vadd.xlane.f32.xlu0 %v511_v46  ;;  %509 = vadd.xlane.f32.xlu1 %v508_v47  ;;  %v562_v46 = vsel %vm152_vm1, %v362_v37, 0.0  ;;  %v365_v47 = vmul.f32 %v2362_v38, %v63_v40  ;;  %v96_v37 = vld [vmem:[%s4087_s1 + $0x240] sm:$0xff] }
 0x10f   :  { %v571_v52 = vsel %vm152_vm1, %v365_v47, 0.0  ;;  %v99_v47 = vld [vmem:[%s4087_s1 + $0x258] sm:$0xff] }
 0x111   :  { %518 = vadd.xlane.f32.xlu0 %v517_v53  ;;  %515 = vadd.xlane.f32.xlu1 %v514_v54  ;;  %v568_v53 = vsel %vm152_vm1, %v364_v48, 0.0  ;;  %v367_v54 = vmul.f32 %v2362_v38, %v65_v49  ;;  %v98_v48 = vld [vmem:[%s4087_s1 + $0x250] sm:$0xff] }
 0x113   :  { %v577_v58 = vsel %vm152_vm1, %v367_v54, 0.0  ;;  %v101_v54 = vld [vmem:[%s4087_s1 + $0x268] sm:$0xff] }
 0x115   :  { %524 = vadd.xlane.f32.xlu0 %v523_v59  ;;  %521 = vadd.xlane.f32.xlu1 %v520_v60  ;;  %v574_v59 = vsel %vm152_vm1, %v366_v55, 0.0  ;;  %v369_v60 = vmul.f32 %v2362_v38, %v67_v56  ;;  %v100_v55 = vld [vmem:[%s4087_s1 + $0x260] sm:$0xff] }
 0x117   :  { %v583_v0 = vsel %vm152_vm1, %v369_v60, 0.0  ;;  %v103_v60 = vld [vmem:[%s4087_s1 + $0x278] sm:$0xff] }
 0x119   :  { %530 = vadd.xlane.f32.xlu0 %v529_v1  ;;  %527 = vadd.xlane.f32.xlu1 %v526_v2  ;;  %v580_v1 = vsel %vm152_vm1, %v368_v61, 0.0  ;;  %v371_v2 = vmul.f32 %v2362_v38, %v69_v62  ;;  %v102_v61 = vld [vmem:[%s4087_s1 + $0x270] sm:$0xff] }
 0x11b   :  { %v589_v6 = vsel %vm152_vm1, %v371_v2, 0.0  ;;  %v73_v2 = vld [vmem:[%s4087_s1 + $0x188] sm:$0xff] }
 0x11d   :  { %536 = vadd.xlane.f32.xlu0 %v535_v7  ;;  %533 = vadd.xlane.f32.xlu1 %v532_v8  ;;  %v586_v7 = vsel %vm152_vm1, %v370_v3, 0.0  ;;  %v373_v8 = vmul.f32 %v2362_v38, %v71_v4  ;;  %v91_v38 = vld [vmem:[%s4087_s1 + $0x218] sm:$0xff]  ;;  %v72_v3 = vld [vmem:[%s4087_s1 + $0x180] sm:$0xff] }
 0x11f   :  { %v595_v12 = vsel %vm152_vm1, %v373_v8, 0.0  ;;  %v74_v8 = vld [vmem:[%s4087_s1 + $0x190] sm:$0xff] }
 0x121   :  { %542 = vadd.xlane.f32.xlu0 %v541_v13  ;;  %539 = vadd.xlane.f32.xlu1 %v538_v15  ;;  %v592_v13 = vsel %vm152_vm1, %v372_v9, 0.0  ;;  %v391_v15 = vmul.f32 %v2365_v39, %v89_v10 }
 0x123   :  { %v649_v19 = vsel %vm152_vm1, %v391_v15, 0.0  ;;  %v76_v15 = vld [vmem:[%s4087_s1 + $0x1a0] sm:$0xff] }
 0x125   :  { %548 = vadd.xlane.f32.xlu0 %v547_v23  ;;  %545 = vadd.xlane.f32.xlu1 %v544_v24  ;;  %v393_v23 = vmul.f32 %v2365_v39, %v91_v38  ;;  %v392_v24 = vmul.f32 %v2365_v39, %v90_v18 }
 0x127   :  { %v655_v21 = vsel %vm152_vm1, %v393_v23, 0.0  ;;  %v652_v27 = vsel %vm152_vm1, %v392_v24, 0.0  ;;  %v78_v23 = vld [vmem:[%s4087_s1 + $0x1b0] sm:$0xff] }
 0x129   :  { %554 = vadd.xlane.f32.xlu0 %v553_v29  ;;  %551 = vadd.xlane.f32.xlu1 %v550_v28  ;;  %v395_v29 = vmul.f32 %v2365_v39, %v93_v25  ;;  %v394_v28 = vmul.f32 %v2365_v39, %v92_v26  ;;  %v2727_v26 = vpop.xlane.xlu0 %234 }
 0x12b   :  { %v661_v33 = vsel %vm152_vm1, %v395_v29, 0.0  ;;  %v658_v32 = vsel %vm152_vm1, %v394_v28, 0.0  ;;  %v81_v29 = vld [vmem:[%s4087_s1 + $0x1c8] sm:$0xff]  ;;  %v80_v28 = vld [vmem:[%s4087_s1 + $0x1c0] sm:$0xff] }
 0x12d   :  { %560 = vadd.xlane.f32.xlu0 %v559_v34  ;;  %557 = vadd.xlane.f32.xlu1 %v556_v35  ;;  %v397_v34 = vmul.f32 %v2365_v39, %v95_v30  ;;  %v396_v35 = vmul.f32 %v2365_v39, %v94_v31  ;;  %v2739_v30 = vrot.slane %v2727_v26, %v2340_v22  ;;  %v82_v22 = vld [vmem:[%s4087_s1 + $0x1d0] sm:$0xff] }
 0x12f   :  { %v667_v40 = vsel %vm152_vm1, %v397_v34, 0.0  ;;  %v664_v41 = vsel %vm152_vm1, %v396_v35, 0.0  ;;  %v382_v34 = vmul.f32 %v2370_v43, %v80_v28  ;;  %v2288_v35 = vmov 0   ;;  %v108_v28 = vld [vmem:[%s4087_s1 + $0x2a0] sm:$0xff] }
 0x130   :  { %2254 = vset.pattern.permute.xlu1 %v2288_v35  ;;  %2255 = vset.pattern.permute.xlu0 %v2288_v35 }
 0x131   :  { %566 = vadd.xlane.f32.xlu0 %v565_v42  ;;  %563 = vadd.xlane.f32.xlu1 %v562_v46  ;;  %v399_v42 = vmul.f32 %v2365_v39, %v97_v36  ;;  %v398_v46 = vmul.f32 %v2365_v39, %v96_v37  ;;  %v83_v36 = vld [vmem:[%s4087_s1 + $0x1d8] sm:$0xff] }
 0x133   :  { %v673_v49 = vsel %vm152_vm1, %v399_v42, 0.0  ;;  %v670_v51 = vsel %vm152_vm1, %v398_v46, 0.0 }
 0x135   :  { %572 = vadd.xlane.f32.xlu0 %v571_v52  ;;  %569 = vadd.xlane.f32.xlu1 %v568_v53  ;;  %v401_v52 = vmul.f32 %v2365_v39, %v99_v47  ;;  %v400_v53 = vmul.f32 %v2365_v39, %v98_v48  ;;  %v622_v47 = vsel %vm152_vm1, %v382_v34, 0.0  ;;  %v385_v48 = vmul.f32 %v2370_v43, %v83_v36 }
 0x137   :  { %v679_v56 = vsel %vm152_vm1, %v401_v52, 0.0  ;;  %v676_v57 = vsel %vm152_vm1, %v400_v53, 0.0  ;;  %v84_v52 = vld [vmem:[%s4087_s1 + $0x1e0] sm:$0xff] }
 0x139   :  { %578 = vadd.xlane.f32.xlu0 %v577_v58  ;;  %575 = vadd.xlane.f32.xlu1 %v574_v59  ;;  %v403_v58 = vmul.f32 %v2365_v39, %v101_v54  ;;  %v402_v59 = vmul.f32 %v2365_v39, %v100_v55 }
 0x13b   :  { %v685_v62 = vsel %vm152_vm1, %v403_v58, 0.0  ;;  %v682_v63 = vsel %vm152_vm1, %v402_v59, 0.0 }
 0x13d   :  { %584 = vadd.xlane.f32.xlu0 %v583_v0  ;;  %581 = vadd.xlane.f32.xlu1 %v580_v1  ;;  %v405_v0 = vmul.f32 %v2365_v39, %v103_v60  ;;  %v404_v1 = vmul.f32 %v2365_v39, %v102_v61  ;;  %v75_v39 = vld [vmem:[%s4087_s1 + $0x198] sm:$0xff]  ;;  %v386_v60 = vmul.f32 %v2370_v43, %v84_v52 }
 0x13e   :  { %v377_v11 = vmul.f32 %v2370_v43, %v75_v39  ;;  %v87_v61 = vld [vmem:[%s4087_s1 + $0x1f8] sm:$0xff]  ;;  %v104_v39 = vld [vmem:[%s4087_s1 + $0x280] sm:$0xff] }
 0x13f   :  { %v691_v4 = vsel %vm152_vm1, %v405_v0, 0.0  ;;  %v688_v5 = vsel %vm152_vm1, %v404_v1, 0.0 }
 0x140   :  { %v607_v17 = vsel %vm152_vm1, %v377_v11, 0.0 }
 0x141   :  { %590 = vadd.xlane.f32.xlu0 %v589_v6  ;;  %587 = vadd.xlane.f32.xlu1 %v586_v7  ;;  %v375_v6 = vmul.f32 %v2370_v43, %v73_v2  ;;  %v374_v7 = vmul.f32 %v2370_v43, %v72_v3 }
 0x143   :  { %v601_v9 = vsel %vm152_vm1, %v375_v6, 0.0  ;;  %v598_v10 = vsel %vm152_vm1, %v374_v7, 0.0  ;;  %v105_v7 = vld [vmem:[%s4087_s1 + $0x288] sm:$0xff] }
 0x145   :  { %596 = vadd.xlane.f32.xlu0 %v595_v12  ;;  %593 = vadd.xlane.f32.xlu1 %v592_v13  ;;  %v376_v12 = vmul.f32 %v2370_v43, %v74_v8  ;;  %v77_v13 = vld [vmem:[%s4087_s1 + $0x1a8] sm:$0xff] }
 0x146   :  { %v379_v18 = vmul.f32 %v2370_v43, %v77_v13  ;;  %v407_v13 = vmul.f32 %v2373_v44, %v105_v7  ;;  %v114_v7 = vld [vmem:[%s4087_s1 + $0x2d0] sm:$0xff] }
 0x147   :  { %v604_v38 = vsel %vm152_vm1, %v376_v12, 0.0 }
 0x148   :  { %v613_v24 = vsel %vm152_vm1, %v379_v18, 0.0 }
 0x149   :  { %650 = vadd.xlane.f32.xlu0 %v649_v19  ;;  %647 = vadd.xlane.f32.xlu1 %v646_v20  ;;  %v378_v19 = vmul.f32 %v2370_v43, %v76_v15  ;;  %v79_v20 = vld [vmem:[%s4087_s1 + $0x1b8] sm:$0xff]  ;;  %v406_v15 = vmul.f32 %v2373_v44, %v104_v39 }
 0x14b   :  { %v610_v25 = vsel %vm152_vm1, %v378_v19, 0.0 }
 0x14d   :  { %656 = vadd.xlane.f32.xlu0 %v655_v21  ;;  %653 = vadd.xlane.f32.xlu1 %v652_v27  ;;  %v381_v21 = vmul.f32 %v2370_v43, %v79_v20  ;;  %v380_v27 = vmul.f32 %v2370_v43, %v78_v23 }
 0x14f   :  { %v619_v31 = vsel %vm152_vm1, %v381_v21, 0.0 }
 0x151   :  { %662 = vadd.xlane.f32.xlu0 %v661_v33  ;;  %659 = vadd.xlane.f32.xlu1 %v658_v32  ;;  %v616_v33 = vsel %vm152_vm1, %v380_v27, 0.0  ;;  %v383_v32 = vmul.f32 %v2370_v43, %v81_v29  ;;  %v109_v29 = vld [vmem:[%s4087_s1 + $0x2a8] sm:$0xff] }
 0x153   :  { %v625_v46 = vsel %vm152_vm1, %v383_v32, 0.0 }
 0x155   :  { %668 = vadd.xlane.f32.xlu0 %v667_v40  ;;  %665 = vadd.xlane.f32.xlu1 %v664_v41 }
 0x159   :  { %674 = vadd.xlane.f32.xlu0 %v673_v49  ;;  %671 = vadd.xlane.f32.xlu1 %v670_v51  ;;  %v384_v49 = vmul.f32 %v2370_v43, %v82_v22  ;;  %v85_v51 = vld [vmem:[%s4087_s1 + $0x1e8] sm:$0xff]  ;;  %v411_v22 = vmul.f32 %v2373_v44, %v109_v29 }
 0x15a   :  { %v387_v59 = vmul.f32 %v2370_v43, %v85_v51 }
 0x15b   :  { %v628_v58 = vsel %vm152_vm1, %v384_v49, 0.0  ;;  %v709_v52 = vsel %vm152_vm1, %v411_v22, 0.0  ;;  %v121_v22 = vld [vmem:[%s4087_s1 + $0x308] sm:$0xff] }
 0x15c   :  { %v637_v3 = vsel %vm152_vm1, %v387_v59, 0.0  ;;  %v112_v59 = vld [vmem:[%s4087_s1 + $0x2c0] sm:$0xff] }
 0x15d   :  { %680 = vadd.xlane.f32.xlu0 %v679_v56  ;;  %677 = vadd.xlane.f32.xlu1 %v676_v57  ;;  %v631_v57 = vsel %vm152_vm1, %v385_v48, 0.0 }
 0x161   :  { %686 = vadd.xlane.f32.xlu0 %v685_v62  ;;  %683 = vadd.xlane.f32.xlu1 %v682_v63  ;;  %v86_v62 = vld [vmem:[%s4087_s1 + $0x1f0] sm:$0xff] }
 0x162   :  { %v388_v6 = vmul.f32 %v2370_v43, %v86_v62 }
 0x164   :  { %v640_v12 = vsel %vm152_vm1, %v388_v6, 0.0  ;;  %v115_v6 = vld [vmem:[%s4087_s1 + $0x2d8] sm:$0xff] }
 0x165   :  { %692 = vadd.xlane.f32.xlu0 %v691_v4  ;;  %689 = vadd.xlane.f32.xlu1 %v688_v5  ;;  %v634_v4 = vsel %vm152_vm1, %v386_v60, 0.0  ;;  %v389_v5 = vmul.f32 %v2370_v43, %v87_v61 }
 0x167   :  { %v643_v43 = vsel %vm152_vm1, %v389_v5, 0.0  ;;  %v414_v5 = vmul.f32 %v2373_v44, %v112_v59 }
 0x169   :  { %602 = vadd.xlane.f32.xlu0 %v601_v9  ;;  %599 = vadd.xlane.f32.xlu1 %v598_v10 }
 0x16d   :  { %608 = vadd.xlane.f32.xlu0 %v607_v17  ;;  %605 = vadd.xlane.f32.xlu1 %v604_v38  ;;  %v107_v17 = vld [vmem:[%s4087_s1 + $0x298] sm:$0xff]  ;;  %v106_v38 = vld [vmem:[%s4087_s1 + $0x290] sm:$0xff] }
 0x16e   :  { %v409_v21 = vmul.f32 %v2373_v44, %v107_v17  ;;  %v408_v27 = vmul.f32 %v2373_v44, %v106_v38 }
 0x170   :  { %v703_v35 = vsel %vm152_vm1, %v409_v21, 0.0  ;;  %v700_v36 = vsel %vm152_vm1, %v408_v27, 0.0  ;;  %v119_v21 = vld [vmem:[%s4087_s1 + $0x2f8] sm:$0xff]  ;;  %v118_v27 = vld [vmem:[%s4087_s1 + $0x2f0] sm:$0xff] }
 0x171   :  { %614 = vadd.xlane.f32.xlu0 %v613_v24  ;;  %611 = vadd.xlane.f32.xlu1 %v610_v25  ;;  %v697_v24 = vsel %vm152_vm1, %v407_v13, 0.0  ;;  %v694_v25 = vsel %vm152_vm1, %v406_v15, 0.0  ;;  %v117_v13 = vld [vmem:[%s4087_s1 + $0x2e8] sm:$0xff]  ;;  %v116_v15 = vld [vmem:[%s4087_s1 + $0x2e0] sm:$0xff] }
 0x175   :  { %620 = vadd.xlane.f32.xlu0 %v619_v31  ;;  %617 = vadd.xlane.f32.xlu1 %v616_v33 }
 0x176   :  { %v459_v37 = vpop.xlane.xlu1 %458  ;;  %v456_v40 = vpop.xlane.xlu0 %455 }
 0x177   :  { %v2752_v41 = vadd.f32 %v2739_v30, %v459_v37  ;;  %v2755_v42 = vadd.f32 %v2739_v30, %v456_v40  ;;  %v410_v37 = vmul.f32 %v2373_v44, %v108_v28  ;;  %v111_v40 = vld [vmem:[%s4087_s1 + $0x2b8] sm:$0xff] }
 0x179   :  { %626 = vadd.xlane.f32.xlu0 %v625_v46  ;;  %623 = vadd.xlane.f32.xlu1 %v622_v47  ;;  %v110_v46 = vld [vmem:[%s4087_s1 + $0x2b0] sm:$0xff] }
 0x17a   :  { %v462_v53 = vpop.xlane.xlu1 %461  ;;  %v465_v54 = vpop.xlane.xlu0 %464 }
 0x17b   :  { %v2768_v55 = vadd.f32 %v2739_v30, %v462_v53  ;;  %v2771_v56 = vadd.f32 %v2739_v30, %v465_v54  ;;  %v706_v53 = vsel %vm152_vm1, %v410_v37, 0.0  ;;  %v413_v54 = vmul.f32 %v2373_v44, %v111_v40  ;;  %v120_v37 = vld [vmem:[%s4087_s1 + $0x300] sm:$0xff] }
 0x17d   :  { %632 = vadd.xlane.f32.xlu0 %v631_v57  ;;  %629 = vadd.xlane.f32.xlu1 %v628_v58  ;;  %v412_v57 = vmul.f32 %v2373_v44, %v110_v46  ;;  %v113_v58 = vld [vmem:[%s4087_s1 + $0x2c8] sm:$0xff] }
 0x17e   :  { %v468_v63 = vpop.xlane.xlu1 %467  ;;  %v471_v0 = vpop.xlane.xlu0 %470 }
 0x17f   :  { %v2784_v1 = vadd.f32 %v2739_v30, %v468_v63  ;;  %v2787_v2 = vadd.f32 %v2739_v30, %v471_v0  ;;  %v715_v0 = vsel %vm152_vm1, %v413_v54, 0.0  ;;  %v122_v54 = vld [vmem:[%s4087_s1 + $0x310] sm:$0xff] }
 0x181   :  { %638 = vadd.xlane.f32.xlu0 %v637_v3  ;;  %635 = vadd.xlane.f32.xlu1 %v634_v4  ;;  %v712_v3 = vsel %vm152_vm1, %v412_v57, 0.0  ;;  %v415_v4 = vmul.f32 %v2373_v44, %v113_v58 }
 0x182   :  { %v474_v8 = vpop.xlane.xlu1 %473  ;;  %v477_v9 = vpop.xlane.xlu0 %476 }
 0x183   :  { %v2800_v10 = vadd.f32 %v2739_v30, %v474_v8  ;;  %v2803_v11 = vadd.f32 %v2739_v30, %v477_v9  ;;  %v721_v8 = vsel %vm152_vm1, %v415_v4, 0.0  ;;  %v718_v9 = vsel %vm152_vm1, %v414_v5, 0.0  ;;  %v124_v4 = vld [vmem:[%s4087_s1 + $0x320] sm:$0xff] }
 0x185   :  { %644 = vadd.xlane.f32.xlu0 %v643_v43  ;;  %641 = vadd.xlane.f32.xlu1 %v640_v12  ;;  %v417_v43 = vmul.f32 %v2373_v44, %v115_v6  ;;  %v416_v12 = vmul.f32 %v2373_v44, %v114_v7 }
 0x186   :  { %v480_v18 = vpop.xlane.xlu1 %479  ;;  %v483_v19 = vpop.xlane.xlu0 %482 }
 0x187   :  { %v2816_v20 = vadd.f32 %v2739_v30, %v480_v18  ;;  %v2819_v23 = vadd.f32 %v2739_v30, %v483_v19  ;;  %v727_v18 = vsel %vm152_vm1, %v417_v43, 0.0  ;;  %v724_v19 = vsel %vm152_vm1, %v416_v12, 0.0  ;;  %v127_v12 = vld [vmem:[%s4087_s1 + $0x338] sm:$0xff] }
 0x188   :  { %v426_v43 = vmul.f32 %v2376_v45, %v124_v4 }
 0x189   :  { %698 = vadd.xlane.f32.xlu0 %v697_v24  ;;  %695 = vadd.xlane.f32.xlu1 %v694_v25  ;;  %v419_v24 = vmul.f32 %v2373_v44, %v117_v13  ;;  %v418_v25 = vmul.f32 %v2373_v44, %v116_v15  ;;  %v126_v13 = vld [vmem:[%s4087_s1 + $0x330] sm:$0xff] }
 0x18a   :  { %v486_v31 = vpop.xlane.xlu1 %485  ;;  %v489_v33 = vpop.xlane.xlu0 %488 }
 0x18b   :  { %v2832_v32 = vadd.f32 %v2739_v30, %v486_v31  ;;  %v2835_v34 = vadd.f32 %v2739_v30, %v489_v33  ;;  %v733_v31 = vsel %vm152_vm1, %v419_v24, 0.0  ;;  %v730_v33 = vsel %vm152_vm1, %v418_v25, 0.0 }
 0x18c   :  { %v754_v24 = vsel %vm152_vm1, %v426_v43, 0.0  ;;  %v429_v25 = vmul.f32 %v2376_v45, %v127_v12 }
 0x18d   :  { %704 = vadd.xlane.f32.xlu0 %v703_v35  ;;  %701 = vadd.xlane.f32.xlu1 %v700_v36  ;;  %v421_v35 = vmul.f32 %v2373_v44, %v119_v21  ;;  %v420_v36 = vmul.f32 %v2373_v44, %v118_v27  ;;  %v423_v44 = vmul.f32 %v2376_v45, %v121_v22  ;;  %v129_v27 = vld [vmem:[%s4087_s1 + $0x348] sm:$0xff] }
 0x18e   :  { %v492_v47 = vpop.xlane.xlu1 %491  ;;  %v495_v48 = vpop.xlane.xlu0 %494  ;;  %v428_v21 = vmul.f32 %v2376_v45, %v126_v13  ;;  %v135_v13 = vld [vmem:[%s4087_s1 + $0x378] sm:$0xff] }
 0x18f   :  { %v2848_v49 = vadd.f32 %v2739_v30, %v492_v47  ;;  %v2851_v51 = vadd.f32 %v2739_v30, %v495_v48  ;;  %v739_v47 = vsel %vm152_vm1, %v421_v35, 0.0  ;;  %v736_v48 = vsel %vm152_vm1, %v420_v36, 0.0 }
 0x190   :  { %v745_v59 = vsel %vm152_vm1, %v423_v44, 0.0  ;;  %v763_v36 = vsel %vm152_vm1, %v429_v25, 0.0  ;;  %v760_v22 = vsel %vm152_vm1, %v428_v21, 0.0  ;;  %v130_v44 = vld [vmem:[%s4087_s1 + $0x350] sm:$0xff] }
 0x191   :  { %710 = vadd.xlane.f32.xlu0 %v709_v52  ;;  %707 = vadd.xlane.f32.xlu1 %v706_v53  ;;  %v422_v52 = vmul.f32 %v2376_v45, %v120_v37  ;;  %v123_v53 = vld [vmem:[%s4087_s1 + $0x318] sm:$0xff]  ;;  %v431_v37 = vmul.f32 %v2376_v45, %v129_v27 }
 0x192   :  { %v498_v60 = vpop.xlane.xlu1 %497  ;;  %v501_v61 = vpop.xlane.xlu0 %500 }
 0x193   :  { %v2864_v62 = vadd.f32 %v2739_v30, %v498_v60  ;;  %v2867_v63 = vadd.f32 %v2739_v30, %v501_v61  ;;  %v742_v60 = vsel %vm152_vm1, %v422_v52, 0.0  ;;  %v425_v61 = vmul.f32 %v2376_v45, %v123_v53 }
 0x195   :  { %716 = vadd.xlane.f32.xlu0 %v715_v0  ;;  %713 = vadd.xlane.f32.xlu1 %v712_v3  ;;  %v424_v0 = vmul.f32 %v2376_v45, %v122_v54  ;;  %v125_v3 = vld [vmem:[%s4087_s1 + $0x328] sm:$0xff]  ;;  %v751_v7 = vsel %vm152_vm1, %v425_v61, 0.0  ;;  %v769_v54 = vsel %vm152_vm1, %v431_v37, 0.0  ;;  %v432_v61 = vmul.f32 %v2376_v45, %v130_v44  ;;  %v136_v37 = vld [vmem:[%s4087_s1 + $0x380] sm:$0xff] }
 0x196   :  { %v2879_v30 = vpop.xlane.xlu0 %506  ;;  %v2881_v39 = vpop.xlane.xlu1 %503 }
 0x199   :  { %722 = vadd.xlane.f32.xlu0 %v721_v8  ;;  %719 = vadd.xlane.f32.xlu1 %v718_v9  ;;  %v748_v8 = vsel %vm152_vm1, %v424_v0, 0.0  ;;  %v427_v9 = vmul.f32 %v2376_v45, %v125_v3  ;;  %v133_v0 = vld [vmem:[%s4087_s1 + $0x368] sm:$0xff]  ;;  %v132_v3 = vld [vmem:[%s4087_s1 + $0x360] sm:$0xff] }
 0x19a   :  { %v2893_v17 = vpop.xlane.xlu0 %512  ;;  %v2895_v38 = vpop.xlane.xlu1 %509  ;;  %v435_v43 = vmul.f32 %v2376_v45, %v133_v0  ;;  %v434_v12 = vmul.f32 %v2376_v45, %v132_v3 }
 0x19c   :  { %v781_v21 = vsel %vm152_vm1, %v435_v43, 0.0  ;;  %v778_v27 = vsel %vm152_vm1, %v434_v12, 0.0 }
 0x19d   :  { %728 = vadd.xlane.f32.xlu0 %v727_v18  ;;  %725 = vadd.xlane.f32.xlu1 %v724_v19  ;;  %v757_v19 = vsel %vm152_vm1, %v427_v9, 0.0  ;;  %v772_v9 = vsel %vm152_vm1, %v432_v61, 0.0  ;;  %v138_v61 = vld [vmem:[%s4087_s1 + $0x390] sm:$0xff] }
 0x19e   :  { %v2907_v29 = vpop.xlane.xlu0 %518  ;;  %v2909_v28 = vpop.xlane.xlu1 %515  ;;  %v440_v12 = vmul.f32 %v2383_v50, %v138_v61 }
 0x1a1   :  { %734 = vadd.xlane.f32.xlu0 %v733_v31  ;;  %731 = vadd.xlane.f32.xlu1 %v730_v33  ;;  %v128_v31 = vld [vmem:[%s4087_s1 + $0x340] sm:$0xff] }
 0x1a2   :  { %v2921_v40 = vpop.xlane.xlu0 %524  ;;  %v2923_v46 = vpop.xlane.xlu1 %521 }
 0x1a5   :  { %740 = vadd.xlane.f32.xlu0 %v739_v47  ;;  %737 = vadd.xlane.f32.xlu1 %v736_v48  ;;  %v430_v47 = vmul.f32 %v2376_v45, %v128_v31  ;;  %v131_v48 = vld [vmem:[%s4087_s1 + $0x358] sm:$0xff]  ;;  %v437_v31 = vmul.f32 %v2376_v45, %v135_v13  ;;  %v141_v13 = vld [vmem:[%s4087_s1 + $0x3a8] sm:$0xff] }
 0x1a6   :  { %v2935_v57 = vpop.xlane.xlu0 %530  ;;  %v2937_v58 = vpop.xlane.xlu1 %527 }
 0x1a7   :  { %v787_v44 = vsel %vm152_vm1, %v437_v31, 0.0 }
 0x1a9   :  { %746 = vadd.xlane.f32.xlu0 %v745_v59  ;;  %743 = vadd.xlane.f32.xlu1 %v742_v60  ;;  %v766_v59 = vsel %vm152_vm1, %v430_v47, 0.0  ;;  %v433_v60 = vmul.f32 %v2376_v45, %v131_v48 }
 0x1aa   :  { %v2949_v5 = vpop.xlane.xlu0 %536  ;;  %v2951_v6 = vpop.xlane.xlu1 %533 }
 0x1ad   :  { %752 = vadd.xlane.f32.xlu0 %v751_v7  ;;  %749 = vadd.xlane.f32.xlu1 %v748_v8  ;;  %v775_v8 = vsel %vm152_vm1, %v433_v60, 0.0  ;;  %v139_v60 = vld [vmem:[%s4087_s1 + $0x398] sm:$0xff] }
 0x1ae   :  { %v2963_v15 = vpop.xlane.xlu0 %542  ;;  %v2965_v18 = vpop.xlane.xlu1 %539  ;;  %v441_v43 = vmul.f32 %v2383_v50, %v139_v60 }
 0x1b0   :  { %v799_v31 = vsel %vm152_vm1, %v441_v43, 0.0  ;;  %v145_v43 = vld [vmem:[%s4087_s1 + $0x3c8] sm:$0xff] }
 0x1b1   :  { %758 = vadd.xlane.f32.xlu0 %v757_v19  ;;  %755 = vadd.xlane.f32.xlu1 %v754_v24  ;;  %v134_v19 = vld [vmem:[%s4087_s1 + $0x370] sm:$0xff] }
 0x1b2   :  { %v2977_v33 = vpop.xlane.xlu0 %548  ;;  %v2979_v35 = vpop.xlane.xlu1 %545 }
 0x1b5   :  { %764 = vadd.xlane.f32.xlu0 %v763_v36  ;;  %761 = vadd.xlane.f32.xlu1 %v760_v22  ;;  %v436_v36 = vmul.f32 %v2376_v45, %v134_v19  ;;  %v137_v22 = vld [vmem:[%s4087_s1 + $0x388] sm:$0xff]  ;;  %v140_v19 = vld [vmem:[%s4087_s1 + $0x3a0] sm:$0xff] }
 0x1b6   :  { %v2991_v52 = vpop.xlane.xlu0 %554  ;;  %v2993_v53 = vpop.xlane.xlu1 %551  ;;  %v439_v45 = vmul.f32 %v2383_v50, %v137_v22  ;;  %v443_v22 = vmul.f32 %v2383_v50, %v141_v13 }
 0x1b8   :  { %v805_v60 = vsel %vm152_vm1, %v443_v22, 0.0  ;;  %v447_v22 = vmul.f32 %v2383_v50, %v145_v43 }
 0x1b9   :  { %770 = vadd.xlane.f32.xlu0 %v769_v54  ;;  %767 = vadd.xlane.f32.xlu1 %v766_v59  ;;  %v784_v54 = vsel %vm152_vm1, %v436_v36, 0.0  ;;  %v438_v59 = vmul.f32 %v2383_v50, %v136_v37  ;;  %v796_v36 = vsel %vm152_vm1, %v440_v12, 0.0  ;;  %v442_v37 = vmul.f32 %v2383_v50, %v140_v19  ;;  %v144_v12 = vld [vmem:[%s4087_s1 + $0x3c0] sm:$0xff] }
 0x1ba   :  { %v3005_v4 = vpop.xlane.xlu0 %560  ;;  %v3007_v7 = vpop.xlane.xlu1 %557 }
 0x1bb   :  { %v802_v61 = vsel %vm152_vm1, %v442_v37, 0.0  ;;  %v446_v37 = vmul.f32 %v2383_v50, %v144_v12 }
 0x1bd   :  { %776 = vadd.xlane.f32.xlu0 %v775_v8  ;;  %773 = vadd.xlane.f32.xlu1 %v772_v9  ;;  %v793_v8 = vsel %vm152_vm1, %v439_v45, 0.0  ;;  %v790_v9 = vsel %vm152_vm1, %v438_v59, 0.0 }
 0x1be   :  { %v3019_v24 = vpop.xlane.xlu0 %566  ;;  %v3021_v25 = vpop.xlane.xlu1 %563 }
 0x1c1   :  { %782 = vadd.xlane.f32.xlu0 %v781_v21  ;;  %779 = vadd.xlane.f32.xlu1 %v778_v27 }
 0x1c2   :  { %v3033_v47 = vpop.xlane.xlu0 %572  ;;  %v3035_v48 = vpop.xlane.xlu1 %569 }
 0x1c5   :  { %788 = vadd.xlane.f32.xlu0 %v787_v44  ;;  %785 = vadd.xlane.f32.xlu1 %v784_v54  ;;  %v143_v44 = vld [vmem:[%s4087_s1 + $0x3b8] sm:$0xff]  ;;  %v142_v54 = vld [vmem:[%s4087_s1 + $0x3b0] sm:$0xff] }
 0x1c6   :  { %v3047_v0 = vpop.xlane.xlu0 %578  ;;  %v3049_v3 = vpop.xlane.xlu1 %575 }
 0x1c9   :  { %794 = vadd.xlane.f32.xlu0 %v793_v8  ;;  %791 = vadd.xlane.f32.xlu1 %v790_v9  ;;  %v445_v8 = vmul.f32 %v2383_v50, %v143_v44  ;;  %v444_v9 = vmul.f32 %v2383_v50, %v142_v54  ;;  %v147_v44 = vld [vmem:[%s4087_s1 + $0x3d8] sm:$0xff]  ;;  %v146_v54 = vld [vmem:[%s4087_s1 + $0x3d0] sm:$0xff] }
 0x1ca   :  { %v3061_v21 = vpop.xlane.xlu0 %584  ;;  %v3063_v27 = vpop.xlane.xlu1 %581  ;;  %v449_v43 = vmul.f32 %v2383_v50, %v147_v44  ;;  %v448_v12 = vmul.f32 %v2383_v50, %v146_v54 }
 0x1cd   :  { %800 = vadd.xlane.f32.xlu0 %v799_v31  ;;  %797 = vadd.xlane.f32.xlu1 %v796_v36  ;;  %v811_v31 = vsel %vm152_vm1, %v445_v8, 0.0  ;;  %v808_v36 = vsel %vm152_vm1, %v444_v9, 0.0  ;;  %v817_v8 = vsel %vm152_vm1, %v447_v22, 0.0  ;;  %v814_v9 = vsel %vm152_vm1, %v446_v37, 0.0 }
 0x1ce   :  { %v3075_v45 = vpop.xlane.xlu0 %590  ;;  %v3077_v59 = vpop.xlane.xlu1 %587  ;;  %v823_v22 = vsel %vm152_vm1, %v449_v43, 0.0  ;;  %v820_v37 = vsel %vm152_vm1, %v448_v12, 0.0 }
 0x1d1   :  { %806 = vadd.xlane.f32.xlu0 %v805_v60  ;;  %803 = vadd.xlane.f32.xlu1 %v802_v61 }
 0x1d2   :  { %v3089_v13 = vpop.xlane.xlu0 %596  ;;  %v3091_v19 = vpop.xlane.xlu1 %593 }
 0x1d5   :  { %812 = vadd.xlane.f32.xlu0 %v811_v31  ;;  %809 = vadd.xlane.f32.xlu1 %v808_v36  ;;  %v149_v31 = vld [vmem:[%s4087_s1 + $0x3e8] sm:$0xff]  ;;  %v148_v36 = vld [vmem:[%s4087_s1 + $0x3e0] sm:$0xff] }
 0x1d6   :  { %v3103_v60 = vpop.xlane.xlu0 %650  ;;  %v3105_v61 = vpop.xlane.xlu1 %647  ;;  %v451_v44 = vmul.f32 %v2383_v50, %v149_v31  ;;  %v450_v54 = vmul.f32 %v2383_v50, %v148_v36 }
 0x1d7   :  { %4094 = vst [vmem:[#allocation5_spill] sm:$0xff] %v3103_v60  ;;  %4095 = vst [vmem:[#allocation6_spill] sm:$0xff] %v3105_v61 }
 0x1d8   :  { %v829_v43 = vsel %vm152_vm1, %v451_v44, 0.0  ;;  %v826_v12 = vsel %vm152_vm1, %v450_v54, 0.0 }
 0x1d9   :  { %818 = vadd.xlane.f32.xlu0 %v817_v8  ;;  %815 = vadd.xlane.f32.xlu1 %v814_v9  ;;  %v151_v8 = vld [vmem:[%s4087_s1 + $0x3f8] sm:$0xff]  ;;  %v150_v9 = vld [vmem:[%s4087_s1 + $0x3f0] sm:$0xff]  ;;  %s2289_s1 = smov [#allocation2]  }
 0x1da   :  { %v3117_v14 = vpop.xlane.xlu0 %656  ;;  %v3119_v60 = vpop.xlane.xlu1 %653  ;;  %v453_v31 = vmul.f32 %v2383_v50, %v151_v8  ;;  %v452_v36 = vmul.f32 %v2383_v50, %v150_v9  ;;  %s2216_s22 = sshll.u32 %s2289_s1, 4  ;;  %s2217_s22 = int_to_ptr.vmem [resolvable:$true] %s2216_s22 }
 0x1db   :  { %4096 = vst [vmem:[#allocation7_spill] sm:$0xff] %v3117_v14  ;;  %4097 = vst [vmem:[#allocation8_spill] sm:$0xff] %v3119_v60  ;;  %s2260_s23 = scalar_lea.vmem %s2217_s22, 128  ;;  %p2265_p1 = scmp.lt.s32.totalorder %s2217_s22, %s2217_s22 }
 0x1dc   :  { %v835_v61 = vsel %vm152_vm1, %v453_v31, 0.0  ;;  %p2261_p0 = scmp.ne.s32.totalorder %s2217_s22, %s2260_s23  ;;  %p2266_p2 = scmp.lt.s32.totalorder %s2260_s23, %s2260_s23 }
 0x1dd   :  { %824 = vadd.xlane.f32.xlu0 %v823_v22  ;;  %821 = vadd.xlane.f32.xlu1 %v820_v37 }
 0x1de   :  { %v3131_v14 = vpop.xlane.xlu0 %662  ;;  %v3133_v60 = vpop.xlane.xlu1 %659  ;;  %p2267_p3 = por %p2266_p2, %p2265_p1 }
 0x1df   :  { %4098 = vst [vmem:[#allocation9_spill] sm:$0xff] %v3131_v14  ;;  %4099 = vst [vmem:[#allocation10_spill] sm:$0xff] %v3133_v60  ;;  %v832_v14 = vsel %vm152_vm1, %v452_v36, 0.0  ;;  %vm2184_vm1 = vcmask 1041409  }
 0x1e0   :  { %p2268_p4 = pnand %p2267_p3, %p2261_p0 }
 0x1e1   :  { %830 = vadd.xlane.f32.xlu0 %v829_v43  ;;  %827 = vadd.xlane.f32.xlu1 %v826_v12 }
 0x1e2   :  { %v3139_v22 = vpop.xlane.xlu0 %668  ;;  %v3141_v37 = vpop.xlane.xlu1 %665 }
 0x1e5   :  { %836 = vadd.xlane.f32.xlu0 %v835_v61  ;;  %833 = vadd.xlane.f32.xlu1 %v832_v14 }
 0x1e6   :  { %v3145_v60 = vpop.xlane.xlu0 %674  ;;  %v3147_v44 = vpop.xlane.xlu1 %671 }
 0x1ea   :  { %v3149_v54 = vpop.xlane.xlu0 %680  ;;  %v3151_v8 = vpop.xlane.xlu1 %677 }
 0x1eb   :  { %4100 = vst [vmem:[#allocation11_spill] sm:$0xff] %v3149_v54  ;;  %4101 = vst [vmem:[#allocation12_spill] sm:$0xff] %v3151_v8 }
 0x1ee   :  { %v3153_v50 = vpop.xlane.xlu0 %686  ;;  %v3155_v9 = vpop.xlane.xlu1 %683 }
 0x1ef   :  { %4102 = vst [vmem:[#allocation13_spill] sm:$0xff] %v3153_v50  ;;  %4103 = vst [vmem:[#allocation14_spill] sm:$0xff] %v3155_v9 }
 0x1f2   :  { %v3157_v43 = vpop.xlane.xlu0 %692  ;;  %v3159_v12 = vpop.xlane.xlu1 %689 }
 0x1f3   :  { %4104 = vst [vmem:[#allocation15_spill] sm:$0xff] %v3157_v43  ;;  %4105 = vst [vmem:[#allocation16_spill] sm:$0xff] %v3159_v12 }
 0x1f6   :  { %v3161_v31 = vpop.xlane.xlu0 %602  ;;  %v3163_v61 = vpop.xlane.xlu1 %599  ;;  %1139 = vperm.xlu1 %2254, %v2755_v42   ;;  %v845_v42 = vsub.s32 1, %v2336_v16 }
 0x1fa   :  { %v3166_v14 = vpop.xlane.xlu0 %608  ;;  %v3168_v36 = vpop.xlane.xlu1 %605  ;;  %1145 = vperm.xlu1 %2254, %v2768_v55  }
 0x1fb   :  { %1142 = vperm.xlu0 %2255, %v2752_v41  }
 0x1fe   :  { %v3172_v50 = vpop.xlane.xlu0 %614  ;;  %v3174_v9 = vpop.xlane.xlu1 %611  ;;  %1148 = vperm.xlu1 %2254, %v2771_v56   ;;  %v3191_v56 = vrot.slane %v2727_v26, %v845_v42 }
 0x1ff   :  { %1169 = vperm.xlu0 %2255, %v2832_v32  }
 0x200   :  { %v895_v32 = vadd.f32 %v3191_v56, %v2881_v39 }
 0x202   :  { %v3178_v43 = vpop.xlane.xlu0 %620  ;;  %v3180_v12 = vpop.xlane.xlu1 %617  ;;  %1151 = vperm.xlu1 %2254, %v2784_v1  }
 0x203   :  { %1175 = vperm.xlu0 %2255, %v2848_v49   ;;  %v897_v49 = vadd.f32 %v3191_v56, %v2895_v38 }
 0x206   :  { %v3185_v55 = vpop.xlane.xlu0 %626  ;;  %v3187_v41 = vpop.xlane.xlu1 %623  ;;  %1154 = vperm.xlu1 %2254, %v2787_v2  }
 0x207   :  { %1181 = vperm.xlu0 %2255, %v2864_v62   ;;  %v899_v62 = vadd.f32 %v3191_v56, %v2909_v28 }
 0x20a   :  { %v3196_v54 = vpop.xlane.xlu0 %632  ;;  %v3198_v1 = vpop.xlane.xlu1 %629  ;;  %1157 = vperm.xlu1 %2254, %v2800_v10   ;;  %v901_v10 = vadd.f32 %v3191_v56, %v2923_v46 }
 0x20b   :  { %1187 = vperm.xlu0 %2255, %v895_v32  }
 0x20e   :  { %v3203_v8 = vpop.xlane.xlu0 %638  ;;  %v3205_v2 = vpop.xlane.xlu1 %635  ;;  %1160 = vperm.xlu1 %2254, %v2803_v11   ;;  %v903_v11 = vadd.f32 %v3191_v56, %v2937_v58 }
 0x20f   :  { %1193 = vperm.xlu0 %2255, %v897_v49  }
 0x212   :  { %v3210_v39 = vpop.xlane.xlu0 %644  ;;  %v3212_v42 = vpop.xlane.xlu1 %641  ;;  %1163 = vperm.xlu1 %2254, %v2816_v20   ;;  %v905_v20 = vadd.f32 %v3191_v56, %v2951_v6  ;;  %v896_v6 = vadd.f32 %v3191_v56, %v2879_v30 }
 0x213   :  { %1199 = vperm.xlu0 %2255, %v899_v62  }
 0x216   :  { %v3217_v38 = vpop.xlane.xlu0 %698  ;;  %v3219_v32 = vpop.xlane.xlu1 %695  ;;  %1166 = vperm.xlu1 %2254, %v2819_v23   ;;  %v907_v23 = vadd.f32 %v3191_v56, %v2965_v18 }
 0x217   :  { %1205 = vperm.xlu0 %2255, %v901_v10  }
 0x21a   :  { %v3224_v28 = vpop.xlane.xlu0 %704  ;;  %v3226_v49 = vpop.xlane.xlu1 %701  ;;  %1172 = vperm.xlu1 %2254, %v2835_v34   ;;  %v849_v34 = vsub.s32 2, %v2336_v16 }
 0x21b   :  { %1211 = vperm.xlu0 %2255, %v903_v11   ;;  %v909_v11 = vadd.f32 %v3191_v56, %v2979_v35  ;;  %v900_v35 = vadd.f32 %v3191_v56, %v2907_v29  ;;  %v904_v29 = vadd.f32 %v3191_v56, %v2935_v57  ;;  %v908_v57 = vadd.f32 %v3191_v56, %v2963_v15 }
 0x21c   :  { %v3253_v18 = vrot.slane %v2727_v26, %v849_v34  ;;  %v853_v15 = vsub.s32 3, %v2336_v16 }
 0x21e   :  { %v3231_v46 = vpop.xlane.xlu0 %710  ;;  %v3233_v62 = vpop.xlane.xlu1 %707  ;;  %1178 = vperm.xlu1 %2254, %v2851_v51   ;;  %v913_v34 = vadd.f32 %v3253_v18, %v3007_v7  ;;  %v917_v7 = vadd.f32 %v3253_v18, %v3035_v48  ;;  %v921_v48 = vadd.f32 %v3253_v18, %v3063_v27  ;;  %v912_v27 = vadd.f32 %v3253_v18, %v2991_v52 }
 0x21f   :  { %1217 = vperm.xlu0 %2255, %v905_v20  }
 0x222   :  { %v3238_v58 = vpop.xlane.xlu0 %716  ;;  %v3240_v10 = vpop.xlane.xlu1 %713  ;;  %1184 = vperm.xlu1 %2254, %v2867_v63   ;;  %v898_v63 = vadd.f32 %v3191_v56, %v2893_v17  ;;  %v902_v17 = vadd.f32 %v3191_v56, %v2921_v40  ;;  %v906_v40 = vadd.f32 %v3191_v56, %v2949_v5  ;;  %v910_v5 = vadd.f32 %v3191_v56, %v2977_v33 }
 0x223   :  { %4106 = vst [vmem:[#allocation17_spill] sm:$0xff] %v3238_v58  ;;  %1223 = vperm.xlu0 %2255, %v907_v23   ;;  %v911_v23 = vadd.f32 %v3253_v18, %v2993_v53  ;;  %v915_v53 = vadd.f32 %v3253_v18, %v3021_v25  ;;  %v919_v25 = vadd.f32 %v3253_v18, %v3049_v3 }
 0x224   :  { %v923_v3 = vadd.f32 %v3253_v18, %v3077_v59  ;;  %v3321_v59 = vrot.slane %v2727_v26, %v853_v15  ;;  %v914_v56 = vadd.f32 %v3253_v18, %v3005_v4  ;;  %v918_v4 = vadd.f32 %v3253_v18, %v3033_v47 }
 0x225   :  { %v922_v47 = vadd.f32 %v3253_v18, %v3061_v21  ;;  %v926_v21 = vadd.f32 %v3253_v18, %v3089_v13 }
 0x226   :  { %v3248_v51 = vpop.xlane.xlu0 %722  ;;  %v3250_v20 = vpop.xlane.xlu1 %719  ;;  %1190 = vperm.xlu1 %2254, %v896_v6   ;;  %v929_v15 = vadd.f32 %v3321_v59, %v3168_v36  ;;  %v933_v36 = vadd.f32 %v3321_v59, %v3180_v12  ;;  %v937_v12 = vadd.f32 %v3321_v59, %v3198_v1  ;;  %v928_v1 = vadd.f32 %v3321_v59, %v3161_v31 }
 0x227   :  { %1229 = vperm.xlu0 %2255, %v909_v11  }
 0x22a   :  { %v3259_v58 = vpop.xlane.xlu0 %728  ;;  %v3261_v30 = vpop.xlane.xlu1 %725  ;;  %1196 = vperm.xlu1 %2254, %v898_v63  }
 0x22b   :  { %1235 = vperm.xlu0 %2255, %v911_v23  }
 0x22e   :  { %v3267_v6 = vpop.xlane.xlu0 %734  ;;  %v3269_v11 = vpop.xlane.xlu1 %731  ;;  %1202 = vperm.xlu1 %2254, %v900_v35  }
 0x22f   :  { %1241 = vperm.xlu0 %2255, %v913_v34  }
 0x232   :  { %v3275_v63 = vpop.xlane.xlu0 %740  ;;  %v3277_v23 = vpop.xlane.xlu1 %737  ;;  %1208 = vperm.xlu1 %2254, %v902_v17  }
 0x233   :  { %1247 = vperm.xlu0 %2255, %v915_v53  }
 0x236   :  { %v3283_v35 = vpop.xlane.xlu0 %746  ;;  %v3285_v34 = vpop.xlane.xlu1 %743  ;;  %1214 = vperm.xlu1 %2254, %v904_v29  }
 0x237   :  { %1253 = vperm.xlu0 %2255, %v917_v7  }
 0x23a   :  { %v3291_v17 = vpop.xlane.xlu0 %752  ;;  %v3293_v53 = vpop.xlane.xlu1 %749  ;;  %1220 = vperm.xlu1 %2254, %v906_v40  }
 0x23b   :  { %1259 = vperm.xlu0 %2255, %v919_v25  }
 0x23e   :  { %v3299_v29 = vpop.xlane.xlu0 %758  ;;  %v3301_v7 = vpop.xlane.xlu1 %755  ;;  %1226 = vperm.xlu1 %2254, %v908_v57   ;;  %v925_v57 = vadd.f32 %v3253_v18, %v3091_v19  ;;  %v916_v19 = vadd.f32 %v3253_v18, %v3019_v24  ;;  %v920_v24 = vadd.f32 %v3253_v18, %v3047_v0  ;;  %v924_v0 = vadd.f32 %v3253_v18, %v3075_v45 }
 0x23f   :  { %1265 = vperm.xlu0 %2255, %v921_v48   ;;  %v857_v45 = vsub.s32 4, %v2336_v16  ;;  %v930_v18 = vadd.f32 %v3321_v59, %v3166_v14 }
 0x242   :  { %v3307_v40 = vpop.xlane.xlu0 %764  ;;  %v3309_v25 = vpop.xlane.xlu1 %761  ;;  %1232 = vperm.xlu1 %2254, %v910_v5   ;;  %v927_v5 = vadd.f32 %v3321_v59, %v3163_v61  ;;  %v931_v61 = vadd.f32 %v3321_v59, %v3174_v9  ;;  %v935_v9 = vadd.f32 %v3321_v59, %v3187_v41  ;;  %v939_v41 = vadd.f32 %v3321_v59, %v3205_v2 }
 0x243   :  { %1271 = vperm.xlu0 %2255, %v923_v3   ;;  %v3389_v2 = vrot.slane %v2727_v26, %v857_v45  ;;  %v4110_v45 = vld [vmem:[#allocation8_spill] sm:$0xff] }
 0x246   :  { %v3316_v48 = vpop.xlane.xlu0 %770  ;;  %v3318_v33 = vpop.xlane.xlu1 %767  ;;  %1238 = vperm.xlu1 %2254, %v912_v27  }
 0x247   :  { %1277 = vperm.xlu0 %2255, %v925_v57  }
 0x24a   :  { %v3327_v3 = vpop.xlane.xlu0 %776  ;;  %v3329_v52 = vpop.xlane.xlu1 %773  ;;  %1244 = vperm.xlu1 %2254, %v914_v56  }
 0x24b   :  { %1283 = vperm.xlu0 %2255, %v927_v5  }
 0x24e   :  { %v3335_v27 = vpop.xlane.xlu0 %782  ;;  %v3337_v57 = vpop.xlane.xlu1 %779  ;;  %1250 = vperm.xlu1 %2254, %v916_v19  }
 0x24f   :  { %1289 = vperm.xlu0 %2255, %v929_v15  }
 0x252   :  { %v3343_v56 = vpop.xlane.xlu0 %788  ;;  %v3345_v5 = vpop.xlane.xlu1 %785  ;;  %1256 = vperm.xlu1 %2254, %v918_v4  }
 0x253   :  { %4107 = vst [vmem:[#allocation18_spill] sm:$0xff] %v3343_v56  ;;  %4108 = vst [vmem:[#allocation19_spill] sm:$0xff] %v3345_v5  ;;  %1295 = vperm.xlu0 %2255, %v931_v61  }
 0x256   :  { %v3351_v19 = vpop.xlane.xlu0 %794  ;;  %1262 = vperm.xlu1 %2254, %v920_v24   ;;  %v3353_v15 = vpop.xlane.xlu1 %791 }
 0x257   :  { %1301 = vperm.xlu0 %2255, %v933_v36  }
 0x25a   :  { %v3359_v4 = vpop.xlane.xlu0 %800  ;;  %1268 = vperm.xlu1 %2254, %v922_v47   ;;  %v3361_v61 = vpop.xlane.xlu1 %797 }
 0x25b   :  { %1307 = vperm.xlu0 %2255, %v935_v9  }
 0x25e   :  { %v3367_v24 = vpop.xlane.xlu0 %806  ;;  %1274 = vperm.xlu1 %2254, %v924_v0   ;;  %v3369_v36 = vpop.xlane.xlu1 %803  ;;  %v941_v0 = vadd.f32 %v3321_v59, %v3212_v42  ;;  %v861_v42 = vsub.s32 5, %v2336_v16 }
 0x25f   :  { %1313 = vperm.xlu0 %2255, %v937_v12  }
 0x260   :  { %v3407_v14 = vrot.slane %v2727_v26, %v861_v42 }
 0x262   :  { %v3375_v47 = vpop.xlane.xlu0 %812  ;;  %1280 = vperm.xlu1 %2254, %v926_v21   ;;  %v3377_v9 = vpop.xlane.xlu1 %809  ;;  %v4109_v21 = vld [vmem:[#allocation6_spill] sm:$0xff]  ;;  %v961_v42 = vadd.f32 %v3407_v14, %v3226_v49  ;;  %v869_v49 = vsub.s32 7, %v2336_v16 }
 0x263   :  { %1319 = vperm.xlu0 %2255, %v939_v41   ;;  %v943_v41 = vadd.f32 %v3389_v2, %v4109_v21 }
 0x266   :  { %v3384_v12 = vpop.xlane.xlu0 %818  ;;  %1286 = vperm.xlu1 %2254, %v928_v1   ;;  %v3386_v13 = vpop.xlane.xlu1 %815  ;;  %v932_v1 = vadd.f32 %v3321_v59, %v3172_v50 }
 0x267   :  { %1325 = vperm.xlu0 %2255, %v941_v0   ;;  %v945_v0 = vadd.f32 %v3389_v2, %v4110_v45  ;;  %v865_v45 = vsub.s32 6, %v2336_v16 }
 0x26a   :  { %v3395_v56 = vpop.xlane.xlu0 %824  ;;  %1292 = vperm.xlu1 %2254, %v930_v18   ;;  %v3397_v31 = vpop.xlane.xlu1 %821  ;;  %v934_v18 = vadd.f32 %v3321_v59, %v3178_v43 }
 0x26b   :  { %1331 = vperm.xlu0 %2255, %v943_v41   ;;  %v959_v41 = vadd.f32 %v3407_v14, %v3219_v32  ;;  %v938_v32 = vadd.f32 %v3321_v59, %v3196_v54 }
 0x26e   :  { %1298 = vperm.xlu1 %2254, %v932_v1   ;;  %v3404_v5 = vpop.xlane.xlu1 %827  ;;  %v3411_v21 = vpop.xlane.xlu0 %830  ;;  %v936_v1 = vadd.f32 %v3321_v59, %v3185_v55 }
 0x26f   :  { %4111 = vst [vmem:[#allocation6_spill] sm:$0xff] %v3404_v5  ;;  %1337 = vperm.xlu0 %2255, %v945_v0   ;;  %v3427_v5 = vrot.slane %v2727_v26, %v865_v45  ;;  %v962_v45 = vadd.f32 %v3407_v14, %v3224_v28  ;;  %v4115_v28 = vld [vmem:[#allocation5_spill] sm:$0xff] }
 0x272   :  { %1304 = vperm.xlu1 %2254, %v934_v18   ;;  %v3415_v50 = vpop.xlane.xlu1 %833  ;;  %v3422_v0 = vpop.xlane.xlu0 %836  ;;  %v976_v18 = vadd.f32 %v3427_v5, %v3283_v35  ;;  %v3447_v35 = vrot.slane %v2727_v26, %v869_v49 }
 0x273   :  { %1379 = vperm.xlu0 %2255, %v959_v41   ;;  %4112 = vst [vmem:[#allocation8_spill] sm:$0xff] %v3422_v0 }
 0x276   :  { %1310 = vperm.xlu1 %2254, %v936_v1   ;;  %v3424_v43 = vpop.permute.xlu1 %1139  ;;  %v940_v1 = vadd.f32 %v3321_v59, %v3203_v8 }
 0x277   :  { %1385 = vperm.xlu0 %2255, %v961_v42  }
 0x27a   :  { %v3433_v41 = vpop.permute.xlu0 %1142  ;;  %1316 = vperm.xlu1 %2254, %v938_v32   ;;  %v3435_v55 = vpop.permute.xlu1 %1145  ;;  %v942_v32 = vadd.f32 %v3321_v59, %v3210_v39  ;;  %v4118_v39 = vld [vmem:[#allocation7_spill] sm:$0xff] }
 0x27b   :  { %1430 = vperm.xlu0 %2255, %v976_v18   ;;  %v991_v18 = vadd.f32 %v3447_v35, %v3353_v15  ;;  %v946_v59 = vadd.f32 %v3389_v2, %v4118_v39  ;;  %v978_v15 = vadd.f32 %v3427_v5, %v3291_v17  ;;  %v975_v17 = vadd.f32 %v3427_v5, %v3285_v34 }
 0x27c   :  { %v979_v39 = vadd.f32 %v3427_v5, %v3301_v7  ;;  %v977_v34 = vadd.f32 %v3427_v5, %v3293_v53  ;;  %v980_v7 = vadd.f32 %v3427_v5, %v3299_v29  ;;  %v963_v53 = vadd.f32 %v3407_v14, %v3233_v62 }
 0x27d   :  { %v981_v29 = vadd.f32 %v3427_v5, %v3309_v25  ;;  %v964_v62 = vadd.f32 %v3407_v14, %v3231_v46  ;;  %v982_v25 = vadd.f32 %v3427_v5, %v3307_v40  ;;  %v965_v46 = vadd.f32 %v3407_v14, %v3240_v10  ;;  %v4132_v10 = vld [vmem:[#allocation17_spill] sm:$0xff] }
 0x27e   :  { %v3442_v42 = vpop.permute.xlu0 %1169  ;;  %1322 = vperm.xlu1 %2254, %v940_v1   ;;  %v3444_v54 = vpop.permute.xlu1 %1148  ;;  %v944_v1 = vadd.f32 %v3389_v2, %v4115_v28  ;;  %v949_v28 = vadd.f32 %v3389_v2, %v3141_v37  ;;  %v983_v40 = vadd.f32 %v3427_v5, %v3318_v33  ;;  %v966_v33 = vadd.f32 %v3407_v14, %v4132_v10 }
 0x27f   :  { %4113 = vst [vmem:[#allocation20_spill] sm:$0xff] %v3442_v42  ;;  %1388 = vperm.xlu0 %2255, %v962_v45   ;;  %v4116_v42 = vld [vmem:[#allocation9_spill] sm:$0xff]  ;;  %v4136_v10 = vlaneseq }
 0x280   :  { %v948_v26 = vadd.f32 %v3389_v2, %v4116_v42  ;;  %v960_v42 = vadd.f32 %v3407_v14, %v3217_v38  ;;  %v4120_v38 = vld [vmem:[#allocation10_spill] sm:$0xff] }
 0x281   :  { %v947_v37 = vadd.f32 %v3389_v2, %v4120_v38  ;;  %v951_v38 = vadd.f32 %v3389_v2, %v3147_v44  ;;  %v993_v44 = vadd.f32 %v3447_v35, %v3361_v61  ;;  %v4129_v61 = vld [vmem:[#allocation12_spill] sm:$0xff] }
 0x282   :  { %v3453_v0 = vpop.permute.xlu0 %1175  ;;  %1328 = vperm.xlu1 %2254, %v942_v32   ;;  %v3455_v8 = vpop.permute.xlu1 %1151 }
 0x283   :  { %4114 = vst [vmem:[#allocation21_spill] sm:$0xff] %v3453_v0  ;;  %1475 = vperm.xlu0 %2255, %v991_v18  }
 0x286   :  { %v3461_v49 = vpop.permute.xlu0 %1181  ;;  %1334 = vperm.xlu1 %2254, %v944_v1   ;;  %v3463_v45 = vpop.permute.xlu1 %1154 }
 0x287   :  { %4117 = vst [vmem:[#allocation5_spill] sm:$0xff] %v3461_v49  ;;  %1346 = vperm.xlu0 %2255, %v948_v26  }
 0x28a   :  { %v3469_v32 = vpop.permute.xlu0 %1187  ;;  %1340 = vperm.xlu1 %2254, %v946_v59   ;;  %v3471_v18 = vpop.permute.xlu1 %1157 }
 0x28b   :  { %1436 = vperm.xlu0 %2255, %v978_v15  }
 0x28e   :  { %v3477_v1 = vpop.permute.xlu0 %1193  ;;  %1382 = vperm.xlu1 %2254, %v960_v42   ;;  %v3479_v26 = vpop.permute.xlu1 %1160  ;;  %v950_v42 = vadd.f32 %v3389_v2, %v3139_v22  ;;  %v992_v22 = vadd.f32 %v3447_v35, %v3351_v19  ;;  %v952_v19 = vadd.f32 %v3389_v2, %v3145_v60  ;;  %v994_v60 = vadd.f32 %v3447_v35, %v3359_v4 }
 0x28f   :  { %1349 = vperm.xlu0 %2255, %v949_v28   ;;  %v995_v4 = vadd.f32 %v3447_v35, %v3369_v36  ;;  %v996_v36 = vadd.f32 %v3447_v35, %v3367_v24 }
 0x292   :  { %v3485_v59 = vpop.permute.xlu0 %1199  ;;  %1427 = vperm.xlu1 %2254, %v975_v17   ;;  %v3487_v15 = vpop.permute.xlu1 %1163 }
 0x293   :  { %4119 = vst [vmem:[#allocation9_spill] sm:$0xff] %v3487_v15  ;;  %1439 = vperm.xlu0 %2255, %v979_v39  }
 0x296   :  { %v3493_v49 = vpop.permute.xlu0 %1205  ;;  %1343 = vperm.xlu1 %2254, %v947_v37   ;;  %v3495_v28 = vpop.permute.xlu1 %1166 }
 0x297   :  { %4121 = vst [vmem:[#allocation7_spill] sm:$0xff] %v3495_v28  ;;  %1352 = vperm.xlu0 %2255, %v950_v42  }
 0x29a   :  { %v3501_v17 = vpop.permute.xlu0 %1211  ;;  %1433 = vperm.xlu1 %2254, %v977_v34   ;;  %v3503_v39 = vpop.permute.xlu1 %1172 }
 0x29b   :  { %4122 = vst [vmem:[#allocation10_spill] sm:$0xff] %v3501_v17  ;;  %4123 = vst [vmem:[#allocation22_spill] sm:$0xff] %v3503_v39  ;;  %1442 = vperm.xlu0 %2255, %v980_v7  }
 0x29e   :  { %v3509_v37 = vpop.permute.xlu0 %1217  ;;  %1478 = vperm.xlu1 %2254, %v992_v22   ;;  %v3511_v42 = vpop.permute.xlu1 %1178 }
 0x29f   :  { %4124 = vst [vmem:[#allocation23_spill] sm:$0xff] %v3509_v37  ;;  %4125 = vst [vmem:[#allocation24_spill] sm:$0xff] %v3511_v42  ;;  %1355 = vperm.xlu0 %2255, %v951_v38  }
 0x2a2   :  { %v3517_v34 = vpop.permute.xlu0 %1223  ;;  %1391 = vperm.xlu1 %2254, %v963_v53   ;;  %v3519_v7 = vpop.permute.xlu1 %1184 }
 0x2a3   :  { %4126 = vst [vmem:[#allocation25_spill] sm:$0xff] %v3517_v34  ;;  %4127 = vst [vmem:[#allocation26_spill] sm:$0xff] %v3519_v7  ;;  %1445 = vperm.xlu0 %2255, %v981_v29   ;;  %v3578_v34 = vand.u32 127, %v4136_v10  ;;  %v997_v10 = vadd.f32 %v3447_v35, %v3377_v9 }
 0x2a5   :  { %v1526_v24 = vadd.s32 4294967288, %v3578_v34  ;;  %v1540_v39 = vadd.s32 4294967272, %v3578_v34  ;;  %v1554_v28 = vadd.s32 4294967256, %v3578_v34 }
 0x2a6   :  { %v3525_v22 = vpop.permute.xlu0 %1229  ;;  %1481 = vperm.xlu1 %2254, %v993_v44   ;;  %v3527_v38 = vpop.permute.xlu1 %1190  ;;  %v953_v44 = vadd.f32 %v3389_v2, %v4129_v61  ;;  %v4130_v61 = vld [vmem:[#allocation11_spill] sm:$0xff] }
 0x2a7   :  { %4128 = vst [vmem:[#allocation27_spill] sm:$0xff] %v3525_v22  ;;  %1358 = vperm.xlu0 %2255, %v952_v19  }
 0x2aa   :  { %v3533_v53 = vpop.permute.xlu0 %1235  ;;  %1394 = vperm.xlu1 %2254, %v964_v62   ;;  %v3535_v29 = vpop.permute.xlu1 %1196 }
 0x2ab   :  { %1448 = vperm.xlu0 %2255, %v982_v25  }
 0x2ae   :  { %v3541_v7 = vpop.permute.xlu0 %1241  ;;  %1484 = vperm.xlu1 %2254, %v994_v60   ;;  %v3543_v19 = vpop.permute.xlu1 %1202  ;;  %v954_v60 = vadd.f32 %v3389_v2, %v4130_v61  ;;  %v4134_v61 = vld [vmem:[#allocation14_spill] sm:$0xff] }
 0x2af   :  { %1361 = vperm.xlu0 %2255, %v953_v44  }
 0x2b2   :  { %v3549_v62 = vpop.permute.xlu0 %1247  ;;  %1397 = vperm.xlu1 %2254, %v965_v46   ;;  %v3551_v25 = vpop.permute.xlu1 %1208  ;;  %v984_v46 = vadd.f32 %v3427_v5, %v3316_v48  ;;  %v967_v48 = vadd.f32 %v3407_v14, %v3250_v20  ;;  %v3596_v20 = vsub.s32 %v3578_v34, %v2336_v16 }
 0x2b3   :  { %1451 = vperm.xlu0 %2255, %v983_v40  }
 0x2b6   :  { %v3557_v22 = vpop.permute.xlu0 %1253  ;;  %1487 = vperm.xlu1 %2254, %v995_v4   ;;  %v3559_v44 = vpop.permute.xlu1 %1214  ;;  %v955_v4 = vadd.f32 %v3389_v2, %v4134_v61 }
 0x2b7   :  { %4131 = vst [vmem:[#allocation12_spill] sm:$0xff] %v3559_v44  ;;  %1364 = vperm.xlu0 %2255, %v954_v60  }
 0x2ba   :  { %v3565_v0 = vpop.permute.xlu0 %1259  ;;  %1400 = vperm.xlu1 %2254, %v966_v33   ;;  %v3567_v40 = vpop.permute.xlu1 %1220  ;;  %v985_v33 = vadd.f32 %v3427_v5, %v3329_v52  ;;  %v3599_v52 = vsub.s32 %v1526_v24, %v2336_v16  ;;  %v968_v24 = vadd.f32 %v3407_v14, %v3248_v51  ;;  %v1561_v51 = vadd.s32 4294967248, %v3578_v34 }
 0x2bb   :  { %4133 = vst [vmem:[#allocation11_spill] sm:$0xff] %v3567_v40  ;;  %1454 = vperm.xlu0 %2255, %v984_v46   ;;  %v1533_v46 = vadd.s32 4294967280, %v3578_v34  ;;  %v986_v40 = vadd.f32 %v3427_v5, %v3327_v3 }
 0x2be   :  { %v3573_v42 = vpop.permute.xlu0 %1265  ;;  %1490 = vperm.xlu1 %2254, %v996_v36   ;;  %v3575_v60 = vpop.permute.xlu1 %1226 }
 0x2bf   :  { %4135 = vst [vmem:[#allocation17_spill] sm:$0xff] %v3575_v60  ;;  %1367 = vperm.xlu0 %2255, %v955_v4   ;;  %v4138_v4 = vld [vmem:[#allocation13_spill] sm:$0xff] }
 0x2c0   :  { %v956_v60 = vadd.f32 %v3389_v2, %v4138_v4  ;;  %v1713_v4 = vrot.slane %v3533_v53, %v3596_v20 }
 0x2c2   :  { %v3586_v61 = vpop.permute.xlu0 %1271  ;;  %1403 = vperm.xlu1 %2254, %v967_v48   ;;  %v3588_v36 = vpop.permute.xlu1 %1232  ;;  %v3603_v48 = vsub.s32 %v1533_v46, %v2336_v16 }
 0x2c3   :  { %4137 = vst [vmem:[#allocation14_spill] sm:$0xff] %v3588_v36  ;;  %1457 = vperm.xlu0 %2255, %v985_v33   ;;  %v1547_v33 = vadd.s32 4294967264, %v3578_v34 }
 0x2c4   :  { %v1722_v46 = vrot.slane %v3541_v7, %v3603_v48 }
 0x2c6   :  { %v3606_v36 = vpop.permute.xlu0 %1277  ;;  %1493 = vperm.xlu1 %2254, %v997_v10   ;;  %v1239_v9 = vpop.permute.xlu1 %1238  ;;  %v3618_v10 = vsub.s32 %v1540_v39, %v2336_v16  ;;  %v4139_v39 = vld [vmem:[#allocation16_spill] sm:$0xff] }
 0x2c7   :  { %v1717_v37 = vrot.slane %v1239_v9, %v3599_v52  ;;  %1370 = vperm.xlu0 %2255, %v956_v60   ;;  %v3623_v60 = vsub.s32 %v1547_v33, %v2336_v16  ;;  %v957_v15 = vadd.f32 %v3389_v2, %v4139_v39 }
 0x2c9   :  { %v1718_v53 = vsel %vm1531_vm2, %v1717_v37, %v1713_v4  ;;  %v998_v37 = vadd.f32 %v3447_v35, %v3375_v47  ;;  %v1732_v33 = vrot.slane %v3549_v62, %v3623_v60  ;;  %v3637_v4 = vsub.s32 %v1554_v28, %v2336_v16 }
 0x2ca   :  { %v3626_v9 = vpop.permute.xlu0 %1283  ;;  %1406 = vperm.xlu1 %2254, %v968_v24   ;;  %v1723_v7 = vsel %vm1538_vm3, %v1722_v46, %v1718_v53  ;;  %v1245_v17 = vpop.permute.xlu1 %1244  ;;  %v1568_v24 = vadd.s32 4294967240, %v3578_v34  ;;  %v969_v28 = vadd.f32 %v3407_v14, %v3261_v30 }
 0x2cb   :  { %v1727_v3 = vrot.slane %v1245_v17, %v3618_v10  ;;  %1460 = vperm.xlu0 %2255, %v986_v40   ;;  %v3642_v17 = vsub.s32 %v1561_v51, %v2336_v16  ;;  %v1575_v40 = vadd.s32 4294967232, %v3578_v34 }
 0x2cd   :  { %v1728_v46 = vsel %vm1545_vm4, %v1727_v3, %v1723_v7  ;;  %v1742_v51 = vrot.slane %v3557_v22, %v3642_v17  ;;  %v987_v7 = vadd.f32 %v3427_v5, %v3337_v57  ;;  %v3656_v3 = vsub.s32 %v1568_v24, %v2336_v16  ;;  %v4140_v24 = vld [vmem:[#allocation15_spill] sm:$0xff] }
 0x2ce   :  { %v3645_v53 = vpop.permute.xlu0 %1289  ;;  %1496 = vperm.xlu1 %2254, %v998_v37   ;;  %v1733_v47 = vsel %vm1552_vm5, %v1732_v33, %v1728_v46  ;;  %v1251_v39 = vpop.permute.xlu1 %1250  ;;  %v1582_v37 = vadd.s32 4294967224, %v3578_v34  ;;  %v3662_v46 = vsub.s32 %v1575_v40, %v2336_v16  ;;  %v958_v44 = vadd.f32 %v3389_v2, %v4140_v24 }
 0x2cf   :  { %v1737_v62 = vrot.slane %v1251_v39, %v3637_v4  ;;  %1373 = vperm.xlu0 %2255, %v957_v15   ;;  %v1589_v15 = vadd.s32 4294967216, %v3578_v34  ;;  %v1603_v2 = vadd.s32 4294967200, %v3578_v34  ;;  %v1610_v24 = vadd.s32 4294967192, %v3578_v34 }
 0x2d0   :  { %v1752_v40 = vrot.slane %v3565_v0, %v3662_v46 }
 0x2d1   :  { %v1738_v33 = vsel %vm1559_vm6, %v1737_v62, %v1733_v47  ;;  %v999_v47 = vadd.f32 %v3447_v35, %v3386_v13  ;;  %v3675_v62 = vsub.s32 %v1582_v37, %v2336_v16  ;;  %v970_v37 = vadd.f32 %v3407_v14, %v3259_v58 }
 0x2d2   :  { %v3664_v30 = vpop.permute.xlu0 %1295  ;;  %1409 = vperm.xlu1 %2254, %v969_v28   ;;  %v1743_v22 = vsel %vm1566_vm7, %v1742_v51, %v1738_v33  ;;  %v1257_v39 = vpop.permute.xlu1 %1256  ;;  %v1596_v28 = vadd.s32 4294967208, %v3578_v34  ;;  %v1617_v58 = vadd.s32 4294967184, %v3578_v34 }
 0x2d3   :  { %v1747_v57 = vrot.slane %v1257_v39, %v3656_v3  ;;  %1463 = vperm.xlu0 %2255, %v987_v7   ;;  %v3680_v7 = vsub.s32 %v1589_v15, %v2336_v16 }
 0x2d5   :  { %v1748_v51 = vsel %vm1573_vm8, %v1747_v57, %v1743_v22  ;;  %v1762_v15 = vrot.slane %v3573_v42, %v3680_v7  ;;  %v988_v22 = vadd.f32 %v3427_v5, %v3335_v27  ;;  %v3694_v57 = vsub.s32 %v1596_v28, %v2336_v16 }
 0x2d6   :  { %v3683_v33 = vpop.permute.xlu0 %1301  ;;  %1499 = vperm.xlu1 %2254, %v999_v47   ;;  %v1753_v13 = vsel %vm1580_vm9, %v1752_v40, %v1748_v51  ;;  %v1263_v39 = vpop.permute.xlu1 %1262  ;;  %v1000_v28 = vadd.f32 %v3447_v35, %v3384_v12 }
 0x2d7   :  { %v1757_v0 = vrot.slane %v1263_v39, %v3675_v62  ;;  %1376 = vperm.xlu0 %2255, %v958_v44   ;;  %v3699_v44 = vsub.s32 %v1603_v2, %v2336_v16  ;;  %v3713_v39 = vsub.s32 %v1610_v24, %v2336_v16 }
 0x2d9   :  { %v1758_v47 = vsel %vm1587_vm10, %v1757_v0, %v1753_v13  ;;  %v1772_v2 = vrot.slane %v3586_v61, %v3699_v44  ;;  %v974_v13 = vadd.f32 %v3407_v14, %v3275_v63  ;;  %v1624_v0 = vadd.s32 4294967176, %v3578_v34 }
 0x2da   :  { %v3702_v40 = vpop.permute.xlu0 %1307  ;;  %1412 = vperm.xlu1 %2254, %v970_v37   ;;  %v1763_v42 = vsel %vm1594_vm11, %v1762_v15, %v1758_v47  ;;  %v1269_v51 = vpop.permute.xlu1 %1268  ;;  %v3718_v15 = vsub.s32 %v1617_v58, %v2336_v16  ;;  %v971_v63 = vadd.f32 %v3407_v14, %v3269_v11  ;;  %v1004_v58 = vadd.f32 %v3447_v35, %v3411_v21 }
 0x2db   :  { %v1767_v27 = vrot.slane %v1269_v51, %v3694_v57  ;;  %1466 = vperm.xlu0 %2255, %v988_v22   ;;  %v1638_v51 = vrot.slane %v3527_v38, %v3599_v52  ;;  %v1005_v21 = vadd.f32 %v3447_v35, %v3415_v50 }
 0x2dc   :  { %v1782_v24 = vrot.slane %v3606_v36, %v3718_v15  ;;  %v1634_v36 = vrot.slane %v3469_v32, %v3596_v20  ;;  %v1643_v32 = vrot.slane %v3477_v1, %v3603_v48  ;;  %v1801_v1 = vrot.slane %v3645_v53, %v3603_v48 }
 0x2dd   :  { %v1768_v37 = vsel %vm4093_vm12, %v1767_v27, %v1763_v42  ;;  %v3731_v42 = vsub.s32 %v1624_v0, %v2336_v16  ;;  %v1001_v16 = vadd.f32 %v3447_v35, %v3397_v31  ;;  %v1648_v0 = vrot.slane %v3535_v29, %v3618_v10 }
 0x2de   :  { %v3720_v22 = vpop.permute.xlu0 %1313  ;;  %1502 = vperm.xlu1 %2254, %v1000_v28   ;;  %v1773_v12 = vsel %vm4092_vm13, %v1772_v2, %v1768_v37  ;;  %v1275_v47 = vpop.permute.xlu1 %1274  ;;  %v1639_v38 = vsel %vm1531_vm2, %v1638_v51, %v1634_v36  ;;  %v1792_v31 = vrot.slane %v3626_v9, %v3596_v20  ;;  %v1530_v29 = vrot.slane %v3433_v41, %v3599_v52 }
 0x2df   :  { %v1777_v61 = vrot.slane %v1275_v47, %v3713_v39  ;;  %1424 = vperm.xlu0 %2255, %v974_v13   ;;  %v1525_v51 = vrot.slane %v3424_v43, %v3596_v20  ;;  %v1002_v53 = vadd.f32 %v3447_v35, %v3395_v56  ;;  %v1544_v43 = vrot.slane %v3444_v54, %v3618_v10 }
 0x2e0   :  { %v1668_v56 = vrot.slane %v3551_v25, %v3656_v3  ;;  %v1558_v25 = vrot.slane %v3463_v45, %v3637_v4 }
 0x2e1   :  { %v1778_v27 = vsel %vm1615_vm14, %v1777_v61, %v1773_v12  ;;  %v972_v61 = vadd.f32 %v3407_v14, %v3267_v6  ;;  %v1653_v6 = vrot.slane %v3485_v59, %v3623_v60  ;;  %v1532_v36 = vsel %vm1531_vm2, %v1530_v29, %v1525_v51  ;;  %v4141_v29 = vld [vmem:[#allocation12_spill] sm:$0xff] }
 0x2e2   :  { %v3736_v28 = vpop.permute.xlu0 %1319  ;;  %1415 = vperm.xlu1 %2254, %v971_v63   ;;  %v1783_v11 = vsel %vm1622_vm15, %v1782_v24, %v1778_v27  ;;  %v1281_v2 = vpop.permute.xlu1 %1280  ;;  %v1644_v63 = vsel %vm1538_vm3, %v1643_v32, %v1639_v38  ;;  %v1663_v38 = vrot.slane %v3493_v49, %v3642_v17  ;;  %v1565_v49 = vrot.slane %v3471_v18, %v3642_v17 }
 0x2e3   :  { %v1787_v13 = vrot.slane %v1281_v2, %v3731_v42  ;;  %1514 = vperm.xlu0 %2255, %v1004_v58   ;;  %v1649_v24 = vsel %vm1545_vm4, %v1648_v0, %v1644_v63  ;;  %v1658_v58 = vrot.slane %v3543_v19, %v3637_v4  ;;  %v1537_v19 = vrot.slane %v3435_v55, %v3603_v48 }
 0x2e4   :  { %v1654_v59 = vsel %vm1552_vm5, %v1653_v6, %v1649_v24  ;;  %v1551_v55 = vrot.slane %v3455_v8, %v3623_v60  ;;  %v1678_v45 = vrot.slane %v4141_v29, %v3675_v62  ;;  %v4142_v24 = vld [vmem:[#allocation9_spill] sm:$0xff] }
 0x2e5   :  { %v3750_v37 = vsel %vm1629_vm0, %v1787_v13, %v1783_v11  ;;  %v1811_v13 = vrot.slane %v3664_v30, %v3623_v60  ;;  %v973_v30 = vadd.f32 %v3407_v14, %v3277_v23  ;;  %v1572_v23 = vrot.slane %v3479_v26, %v3656_v3 }
 0x2e6   :  { %v3754_v12 = vpop.permute.xlu0 %1325  ;;  %1505 = vperm.xlu1 %2254, %v1001_v16   ;;  %v1287_v47 = vpop.permute.xlu1 %1286  ;;  %v1659_v16 = vsel %vm1559_vm6, %v1658_v58, %v1654_v59  ;;  %v1579_v18 = vrot.slane %v4142_v24, %v3662_v46  ;;  %v4143_v58 = vld [vmem:[#allocation10_spill] sm:$0xff]  ;;  %v1831_v59 = vrot.slane %v3702_v40, %v3662_v46 }
 0x2e7   :  { %v1796_v50 = vrot.slane %v1287_v47, %v3599_v52  ;;  %1517 = vperm.xlu0 %2255, %v1005_v21   ;;  %v1539_v47 = vsel %vm1538_vm3, %v1537_v19, %v1532_v36  ;;  %v4145_v19 = vld [vmem:[#allocation6_spill] sm:$0xff] }
 0x2e8   :  { %v1546_v8 = vsel %vm1545_vm4, %v1544_v43, %v1539_v47 }
 0x2e9   :  { %v1797_v9 = vsel %vm1531_vm2, %v1796_v50, %v1792_v31  ;;  %v1664_v50 = vsel %vm1566_vm7, %v1663_v38, %v1659_v16 }
 0x2ea   :  { %v3774_v27 = vpop.permute.xlu0 %1331  ;;  %1418 = vperm.xlu1 %2254, %v972_v61   ;;  %v1802_v41 = vsel %vm1538_vm3, %v1801_v1, %v1797_v9  ;;  %v1293_v11 = vpop.permute.xlu1 %1292  ;;  %v1821_v61 = vrot.slane %v3683_v33, %v3642_v17  ;;  %v1669_v14 = vsel %vm1573_vm8, %v1668_v56, %v1664_v50  ;;  %v1553_v1 = vsel %vm1552_vm5, %v1551_v55, %v1546_v8  ;;  %v4146_v56 = vld [vmem:[#allocation11_spill] sm:$0xff] }
 0x2eb   :  { %v1806_v2 = vrot.slane %v1293_v11, %v3618_v10  ;;  %v1673_v9 = vrot.slane %v4143_v58, %v3662_v46  ;;  %v1560_v6 = vsel %vm1559_vm6, %v1558_v25, %v1553_v1  ;;  %v4149_v50 = vld [vmem:[#allocation19_spill] sm:$0xff]  ;;  %v4151_v1 = vld [vmem:[#allocation17_spill] sm:$0xff] }
 0x2ec   :  { %v1567_v36 = vsel %vm1566_vm7, %v1565_v49, %v1560_v6  ;;  %v1698_v24 = vrot.slane %v4151_v1, %v3713_v39 }
 0x2ed   :  { %v1807_v21 = vsel %vm1545_vm4, %v1806_v2, %v1802_v41  ;;  %v4144_v41 = vld [vmem:[#allocation7_spill] sm:$0xff]  ;;  %v1003_v2 = vadd.f32 %v3447_v35, %v4145_v19  ;;  %v1674_v43 = vsel %vm1580_vm9, %v1673_v9, %v1669_v14  ;;  %v4152_v9 = vld [vmem:[#allocation25_spill] sm:$0xff] }
 0x2ee   :  { %v3796_v0 = vpop.permute.xlu0 %1337  ;;  %1508 = vperm.xlu1 %2254, %v1002_v53   ;;  %v1812_v54 = vsel %vm1552_vm5, %v1811_v13, %v1807_v21  ;;  %v1299_v32 = vpop.permute.xlu1 %1298  ;;  %v1586_v11 = vrot.slane %v4144_v41, %v3675_v62  ;;  %v1574_v13 = vsel %vm1573_vm8, %v1572_v23, %v1567_v36  ;;  %v1679_v16 = vsel %vm1587_vm10, %v1678_v45, %v1674_v43  ;;  %v4150_v23 = vld [vmem:[#allocation20_spill] sm:$0xff]  ;;  %v4155_v43 = vld [vmem:[#allocation21_spill] sm:$0xff] }
 0x2ef   :  { %v1816_v31 = vrot.slane %v1299_v32, %v3637_v4  ;;  %v1688_v21 = vrot.slane %v4146_v56, %v3694_v57  ;;  %v1581_v38 = vsel %vm1580_vm9, %v1579_v18, %v1574_v13  ;;  %v1593_v14 = vrot.slane %v4150_v23, %v3680_v7  ;;  %v4160_v23 = vld [vmem:[#allocation5_spill] sm:$0xff] }
 0x2f0   :  { %v1588_v25 = vsel %vm1587_vm10, %v1586_v11, %v1581_v38  ;;  %v1841_v45 = vrot.slane %v3720_v22, %v3680_v7  ;;  %v4153_v11 = vld [vmem:[#allocation24_spill] sm:$0xff] }
 0x2f1   :  { %v1817_v63 = vsel %vm1559_vm6, %v1816_v31, %v1812_v54  ;;  %v4147_v54 = vld [vmem:[#allocation23_spill] sm:$0xff]  ;;  %v4148_v31 = vld [vmem:[#allocation22_spill] sm:$0xff]  ;;  %v1595_v58 = vsel %vm1594_vm11, %v1593_v14, %v1588_v25  ;;  %v1621_v14 = vrot.slane %v4160_v23, %v3718_v15 }
 0x2f2   :  { %v3822_v51 = vpop.permute.xlu0 %1379  ;;  %1421 = vperm.xlu1 %2254, %v973_v30   ;;  %v1822_v26 = vsel %vm1566_vm7, %v1821_v61, %v1817_v63  ;;  %v1305_v33 = vpop.permute.xlu1 %1304  ;;  %v1683_v32 = vrot.slane %v4147_v54, %v3680_v7  ;;  %v1600_v8 = vrot.slane %v4148_v31, %v3694_v57  ;;  %v989_v61 = vadd.f32 %v3427_v5, %v4149_v50  ;;  %v4159_v50 = vld [vmem:[#allocation8_spill] sm:$0xff] }
 0x2f3   :  { %v1826_v53 = vrot.slane %v1305_v33, %v3656_v3 }
 0x2f4   :  { %v1684_v29 = vsel %vm1594_vm11, %v1683_v32, %v1679_v16  ;;  %v1602_v22 = vsel %vm4093_vm12, %v1600_v8, %v1595_v58  ;;  %v1851_v16 = vrot.slane %v3736_v28, %v3699_v44  ;;  %v4157_v32 = vld [vmem:[#allocation27_spill] sm:$0xff]  ;;  %v4158_v28 = vld [vmem:[#allocation26_spill] sm:$0xff] }
 0x2f5   :  { %v1827_v55 = vsel %vm1573_vm8, %v1826_v53, %v1822_v26  ;;  %v1689_v63 = vsel %vm4093_vm12, %v1688_v21, %v1684_v29  ;;  %v1693_v26 = vrot.slane %v4152_v9, %v3699_v44  ;;  %v1614_v53 = vrot.slane %v4153_v11, %v3713_v39  ;;  %v4156_v21 = vld [vmem:[#allocation14_spill] sm:$0xff] }
 0x2f6   :  { %v3843_v30 = vpop.permute.xlu0 %1385  ;;  %1511 = vperm.xlu1 %2254, %v1003_v2   ;;  %v1832_v47 = vsel %vm1580_vm9, %v1831_v59, %v1827_v55  ;;  %v1311_v40 = vpop.permute.xlu1 %1310  ;;  %v4154_v2 = vld [vmem:[#allocation18_spill] sm:$0xff]  ;;  %v1607_v59 = vrot.slane %v4155_v43, %v3699_v44  ;;  %v1708_v55 = vrot.slane %v4156_v21, %v3731_v42  ;;  %v1628_v8 = vrot.slane %v4158_v28, %v3731_v42 }
 0x2f7   :  { %v1836_v49 = vrot.slane %v1311_v40, %v3675_v62  ;;  %v990_v36 = vadd.f32 %v3427_v5, %v4154_v2  ;;  %v1694_v13 = vsel %vm4092_vm13, %v1693_v26, %v1689_v63  ;;  %v1703_v5 = vrot.slane %v4157_v32, %v3718_v15 }
 0x2f8   :  { %v1699_v56 = vsel %vm1615_vm14, %v1698_v24, %v1694_v13  ;;  %v1609_v54 = vsel %vm4092_vm13, %v1607_v59, %v1602_v22 }
 0x2f9   :  { %v1837_v18 = vsel %vm1587_vm10, %v1836_v49, %v1832_v47  ;;  %v1616_v31 = vsel %vm1615_vm14, %v1614_v53, %v1609_v54  ;;  %v1704_v29 = vsel %vm1622_vm15, %v1703_v5, %v1699_v56 }
 0x2fa   :  { %v3864_v33 = vpop.permute.xlu0 %1430  ;;  %1469 = vperm.xlu1 %2254, %v989_v61   ;;  %v1842_v6 = vsel %vm1594_vm11, %v1841_v45, %v1837_v18  ;;  %v1317_v41 = vpop.permute.xlu1 %1316  ;;  %v1006_v61 = vadd.f32 %v3447_v35, %v4159_v50  ;;  %v1861_v45 = vrot.slane %v3754_v12, %v3718_v15  ;;  %v1709_v63 = vsel %vm1629_vm0, %v1708_v55, %v1704_v29 }
 0x2fb   :  { %v1846_v19 = vrot.slane %v1317_v41, %v3694_v57  ;;  %v1623_v24 = vsel %vm1622_vm15, %v1621_v14, %v1616_v31  ;;  %v2033_v31 = vrot.slane %v3864_v33, %v3599_v52 }
 0x2fc   :  { %v1630_v9 = vsel %vm1629_vm0, %v1628_v8, %v1623_v24 }
 0x2fd   :  { %v1847_v38 = vsel %vm4093_vm12, %v1846_v19, %v1842_v6  ;;  %vm2188_vm12 = vcmask 1043459   ;;  %v2185_v6 = vsel %vm2184_vm1, %v1709_v63, %v1630_v9  ;;  %v1871_v19 = vrot.slane %v3774_v27, %v3596_v20 }
 0x2fe   :  { %v1389_v47 = vpop.permute.xlu0 %1388  ;;  %1472 = vperm.xlu1 %2254, %v990_v36   ;;  %v1852_v40 = vsel %vm4092_vm13, %v1851_v16, %v1847_v38  ;;  %v1323_v25 = vpop.permute.xlu1 %1322  ;;  %vm2186_vm13 = vcmask 1042434   ;;  %v1880_v36 = vrot.slane %v3796_v0, %v3603_v48  ;;  %v1950_v27 = vrot.slane %v3822_v51, %v3596_v20 }
 0x2ff   :  { %v1856_v49 = vrot.slane %v1323_v25, %v3713_v39  ;;  %v2187_v12 = vsel %vm2186_vm13, %v3750_v37, %v2185_v6  ;;  %v1959_v0 = vrot.slane %v3843_v30, %v3603_v48  ;;  %v1964_v54 = vrot.slane %v1389_v47, %v3618_v10 }
 0x300   :  { %vm2192_vm13 = vcmask 1045509   ;;  %vm1009_vm1 = vcmp.lt.s32.totalorder %v3578_v34, 8 }
 0x301   :  { %v1857_v1 = vsel %vm1615_vm14, %v1856_v49, %v1852_v40 }
 0x302   :  { %v1476_v18 = vpop.permute.xlu0 %1475  ;;  %1520 = vperm.xlu1 %2254, %v1006_v61   ;;  %v1862_v35 = vsel %vm1622_vm15, %v1861_v45, %v1857_v1  ;;  %v1329_v58 = vpop.permute.xlu1 %1328 }
 0x303   :  { %v1866_v26 = vrot.slane %v1329_v58, %v3731_v42 }
 0x305   :  { %v1867_v41 = vsel %vm1629_vm0, %v1866_v26, %v1862_v35 }
 0x306   :  { %v3905_v22 = vsel %vm2188_vm12, %v1867_v41, %v2187_v12  ;;  %v1347_v11 = vpop.permute.xlu0 %1346  ;;  %v1335_v53 = vpop.permute.xlu1 %1334 }
 0x307   :  { %v1875_v2 = vrot.slane %v1335_v53, %v3599_v52  ;;  %v1895_v47 = vrot.slane %v1347_v11, %v3637_v4  ;;  %v2108_v11 = vrot.slane %v1476_v18, %v3596_v20 }
 0x309   :  { %v1876_v43 = vsel %vm1531_vm2, %v1875_v2, %v1871_v19 }
 0x30a   :  { %v1437_v59 = vpop.permute.xlu0 %1436  ;;  %v1881_v13 = vsel %vm1538_vm3, %v1880_v36, %v1876_v43  ;;  %v1341_v37 = vpop.permute.xlu1 %1340 }
 0x30b   :  { %v1885_v16 = vrot.slane %v1341_v37, %v3618_v10  ;;  %v2043_v24 = vrot.slane %v1437_v59, %v3618_v10 }
 0x30d   :  { %v1886_v56 = vsel %vm1545_vm4, %v1885_v16, %v1881_v13 }
 0x30e   :  { %v1350_v21 = vpop.permute.xlu0 %1349  ;;  %v1383_v55 = vpop.permute.xlu1 %1382 }
 0x30f   :  { %v1954_v38 = vrot.slane %v1383_v55, %v3599_v52  ;;  %v1900_v61 = vrot.slane %v1350_v21, %v3642_v17 }
 0x311   :  { %v1955_v32 = vsel %vm1531_vm2, %v1954_v38, %v1950_v27 }
 0x312   :  { %v1960_v5 = vsel %vm1538_vm3, %v1959_v0, %v1955_v32  ;;  %v1440_v40 = vpop.permute.xlu0 %1439  ;;  %v1428_v25 = vpop.permute.xlu1 %1427 }
 0x313   :  { %v2029_v28 = vrot.slane %v1428_v25, %v3596_v20  ;;  %v1965_v51 = vsel %vm1545_vm4, %v1964_v54, %v1960_v5  ;;  %v2048_v58 = vrot.slane %v1440_v40, %v3623_v60 }
 0x315   :  { %v2034_v8 = vsel %vm1531_vm2, %v2033_v31, %v2029_v28 }
 0x316   :  { %v1353_v49 = vpop.permute.xlu0 %1352  ;;  %v1344_v50 = vpop.permute.xlu1 %1343 }
 0x317   :  { %v1890_v30 = vrot.slane %v1344_v50, %v3623_v60  ;;  %v1905_v14 = vrot.slane %v1353_v49, %v3656_v3 }
 0x319   :  { %v1891_v23 = vsel %vm1552_vm5, %v1890_v30, %v1886_v56 }
 0x31a   :  { %v1896_v33 = vsel %vm1559_vm6, %v1895_v47, %v1891_v23  ;;  %v1443_v29 = vpop.permute.xlu0 %1442  ;;  %v1434_v45 = vpop.permute.xlu1 %1433 }
 0x31b   :  { %v2038_v63 = vrot.slane %v1434_v45, %v3603_v48  ;;  %v1901_v1 = vsel %vm1566_vm7, %v1900_v61, %v1896_v33  ;;  %v2053_v26 = vrot.slane %v1443_v29, %v3637_v4 }
 0x31c   :  { %v1906_v35 = vsel %vm1573_vm8, %v1905_v14, %v1901_v1 }
 0x31d   :  { %v2039_v9 = vsel %vm1538_vm3, %v2038_v63, %v2034_v8 }
 0x31e   :  { %v2044_v6 = vsel %vm1545_vm4, %v2043_v24, %v2039_v9  ;;  %v1356_v12 = vpop.permute.xlu0 %1355  ;;  %v1479_v41 = vpop.permute.xlu1 %1478 }
 0x31f   :  { %v2112_v53 = vrot.slane %v1479_v41, %v3599_v52  ;;  %v2049_v19 = vsel %vm1552_vm5, %v2048_v58, %v2044_v6 }
 0x320   :  { %v3947_v2 = vsel %vm1559_vm6, %v2053_v26, %v2049_v19 }
 0x321   :  { %v2113_v36 = vsel %vm1531_vm2, %v2112_v53, %v2108_v11  ;;  %vm4161_vm2 = vcmask 786112  }
 0x322   :  { %v3950_v43 = vpop.permute.xlu0 %1445  ;;  %v1392_v59 = vpop.permute.xlu1 %1391 }
 0x323   :  { %v1969_v13 = vrot.slane %v1392_v59, %v3623_v60 }
 0x325   :  { %v1970_v37 = vsel %vm1552_vm5, %v1969_v13, %v1965_v51 }
 0x326   :  { %v1359_v16 = vpop.permute.xlu0 %1358  ;;  %v1482_v56 = vpop.permute.xlu1 %1481 }
 0x327   :  { %v2117_v20 = vrot.slane %v1482_v56, %v3603_v48  ;;  %v1915_v1 = vrot.slane %v1359_v16, %v3675_v62 }
 0x329   :  { %v2118_v52 = vsel %vm1538_vm3, %v2117_v20, %v2113_v36  ;;  %vm4162_vm3 = vcmask 851712  }
 0x32a   :  { %v3956_v18 = vpop.permute.xlu0 %1448  ;;  %v1395_v21 = vpop.permute.xlu1 %1394  ;;  %vm4164_vm12 = vmmov %vm4162_vm3 }
 0x32b   :  { %v1974_v55 = vrot.slane %v1395_v21, %v3637_v4 }
 0x32d   :  { %v1975_v27 = vsel %vm1559_vm6, %v1974_v55, %v1970_v37 }
 0x32e   :  { %v1362_v38 = vpop.permute.xlu0 %1361  ;;  %v1485_v0 = vpop.permute.xlu1 %1484 }
 0x32f   :  { %v2122_v54 = vrot.slane %v1485_v0, %v3618_v10  ;;  %v1920_v24 = vrot.slane %v1362_v38, %v3680_v7 }
 0x331   :  { %v2123_v32 = vsel %vm1545_vm4, %v2122_v54, %v2118_v52  ;;  %vm2190_vm4 = vcmask 1044484  }
 0x332   :  { %v3962_v5 = vpop.permute.xlu0 %1451  ;;  %v1398_v40 = vpop.permute.xlu1 %1397 }
 0x333   :  { %v1979_v48 = vrot.slane %v1398_v40, %v3642_v17 }
 0x335   :  { %v1980_v25 = vsel %vm1566_vm7, %v1979_v48, %v1975_v27 }
 0x336   :  { %v1365_v31 = vpop.permute.xlu0 %1364  ;;  %v1488_v28 = vpop.permute.xlu1 %1487 }
 0x337   :  { %v2127_v51 = vrot.slane %v1488_v28, %v3623_v60  ;;  %v1910_v60 = vrot.slane %v1356_v12, %v3662_v46  ;;  %v1925_v58 = vrot.slane %v1365_v31, %v3694_v57 }
 0x339   :  { %v3968_v8 = vsel %vm1552_vm5, %v2127_v51, %v2123_v32  ;;  %v1911_v9 = vsel %vm1580_vm9, %v1910_v60, %v1906_v35  ;;  %vm4163_vm5 = vmmov %vm4161_vm2 }
 0x33a   :  { %v3970_v49 = vpop.permute.xlu0 %1454  ;;  %v1401_v50 = vpop.permute.xlu1 %1400  ;;  %v1916_v11 = vsel %vm1587_vm10, %v1915_v1, %v1911_v9  ;;  %v2058_v9 = vrot.slane %v3950_v43, %v3642_v17 }
 0x33b   :  { %v1921_v53 = vsel %vm1594_vm11, %v1920_v24, %v1916_v11  ;;  %v1984_v0 = vrot.slane %v1401_v50, %v3656_v3 }
 0x33c   :  { %v1926_v36 = vsel %vm4161_vm2, %v1925_v58, %v1921_v53  ;;  %v2068_v53 = vrot.slane %v3962_v5, %v3662_v46 }
 0x33d   :  { %v1985_v28 = vsel %vm1573_vm8, %v1984_v0, %v1980_v25 }
 0x33e   :  { %v1368_v10 = vpop.permute.xlu0 %1367  ;;  %v3972_v30 = vpop.permute.xlu1 %1490 }
 0x33f   :  { %v1930_v26 = vrot.slane %v1368_v10, %v3699_v44  ;;  %v2132_v25 = vrot.slane %v3972_v30, %v3637_v4 }
 0x341   :  { %v1931_v59 = vsel %vm4162_vm3, %v1930_v26, %v1926_v36  ;;  %v2133_v36 = vsel %vm1559_vm6, %v2132_v25, %v3968_v8  ;;  %vm4165_vm6 = vmmov %vm4161_vm2 }
 0x342   :  { %v3974_v47 = vpop.permute.xlu0 %1457  ;;  %v1404_v61 = vpop.permute.xlu1 %1403 }
 0x343   :  { %v1989_v32 = vrot.slane %v1404_v61, %v3662_v46  ;;  %v2078_v5 = vrot.slane %v3974_v47, %v3680_v7 }
 0x346   :  { %v1371_v23 = vpop.permute.xlu0 %1370  ;;  %v3976_v14 = vpop.permute.xlu1 %1493 }
 0x347   :  { %v1935_v12 = vrot.slane %v1371_v23, %v3713_v39  ;;  %v2137_v26 = vrot.slane %v3976_v14, %v3642_v17  ;;  %v2073_v14 = vrot.slane %v3970_v49, %v3675_v62 }
 0x349   :  { %v1936_v35 = vsel %vm1615_vm14, %v1935_v12, %v1931_v59  ;;  %v2063_v12 = vrot.slane %v3956_v18, %v3656_v3 }
 0x34a   :  { %v3978_v33 = vpop.permute.xlu0 %1460  ;;  %v1407_v29 = vpop.permute.xlu1 %1406 }
 0x34b   :  { %v1994_v48 = vrot.slane %v1407_v29, %v3675_v62  ;;  %v2083_v49 = vrot.slane %v3978_v33, %v3694_v57 }
 0x34e   :  { %v1374_v45 = vpop.permute.xlu0 %1373  ;;  %v3981_v63 = vpop.permute.xlu1 %1496 }
 0x34f   :  { %v1940_v19 = vrot.slane %v1374_v45, %v3718_v15  ;;  %v2142_v4 = vrot.slane %v3981_v63, %v3656_v3  ;;  %v2059_v3 = vsel %vm1566_vm7, %v2058_v9, %v3947_v2 }
 0x351   :  { %v1941_v56 = vsel %vm1622_vm15, %v1940_v19, %v1936_v35 }
 0x352   :  { %v3988_v6 = vpop.permute.xlu0 %1463  ;;  %v1410_v41 = vpop.permute.xlu1 %1409 }
 0x353   :  { %v1999_v31 = vrot.slane %v1410_v41, %v3680_v7  ;;  %v2088_v2 = vrot.slane %v3988_v6, %v3699_v44 }
 0x356   :  { %v1377_v13 = vpop.permute.xlu0 %1376  ;;  %v1500_v37 = vpop.permute.xlu1 %1499 }
 0x357   :  { %v1945_v16 = vrot.slane %v1377_v13, %v3731_v42  ;;  %v2147_v43 = vrot.slane %v1500_v37, %v3662_v46  ;;  %v2138_v46 = vsel %vm1566_vm7, %v2137_v26, %v2133_v36  ;;  %v2064_v13 = vsel %vm1573_vm8, %v2063_v12, %v2059_v3  ;;  %vm4166_vm7 = vmmov %vm4161_vm2 }
 0x358   :  { %v2143_v8 = vsel %vm1573_vm8, %v2142_v4, %v2138_v46  ;;  %v2069_v35 = vsel %vm1580_vm9, %v2068_v53, %v2064_v13  ;;  %vm4167_vm8 = vmmov %vm4162_vm3 }
 0x359   :  { %v1946_v20 = vsel %vm1629_vm0, %v1945_v16, %v1941_v56  ;;  %v2148_v47 = vsel %vm1580_vm9, %v2147_v43, %v2143_v8  ;;  %v2074_v56 = vsel %vm1587_vm10, %v2073_v14, %v2069_v35 }
 0x35a   :  { %v2191_v52 = vsel %vm2190_vm4, %v1946_v20, %v3905_v22  ;;  %v1413_v21 = vpop.permute.xlu1 %1412  ;;  %v1467_v40 = vpop.permute.xlu0 %1466  ;;  %v1990_v22 = vsel %vm1580_vm9, %v1989_v32, %v1985_v28  ;;  %vm4168_vm9 = vmmov %vm4162_vm3 }
 0x35b   :  { %v2004_v51 = vrot.slane %v1413_v21, %v3694_v57  ;;  %v1995_v60 = vsel %vm1587_vm10, %v1994_v48, %v1990_v22  ;;  %v2093_v20 = vrot.slane %v1467_v40, %v3713_v39 }
 0x35c   :  { %v2000_v61 = vsel %vm1594_vm11, %v1999_v31, %v1995_v60 }
 0x35d   :  { %v2005_v29 = vsel %vm4163_vm5, %v2004_v51, %v2000_v61 }
 0x35e   :  { %v1503_v55 = vpop.permute.xlu1 %1502  ;;  %v1425_v45 = vpop.permute.xlu0 %1424 }
 0x35f   :  { %v2024_v41 = vrot.slane %v1425_v45, %v3731_v42  ;;  %v2152_v18 = vrot.slane %v1503_v55, %v3675_v62 }
 0x361   :  { %v2153_v33 = vsel %vm1587_vm10, %v2152_v18, %v2148_v47  ;;  %vm2194_vm10 = vcmask 1046534  }
 0x362   :  { %v1416_v27 = vpop.permute.xlu1 %1415  ;;  %v1515_v37 = vpop.permute.xlu0 %1514 }
 0x363   :  { %v2009_v23 = vrot.slane %v1416_v27, %v3699_v44 }
 0x365   :  { %v2010_v24 = vsel %vm4164_vm12, %v2009_v23, %v2005_v29 }
 0x366   :  { %v1506_v38 = vpop.permute.xlu1 %1505  ;;  %v1518_v32 = vpop.permute.xlu0 %1517 }
 0x367   :  { %v2157_v63 = vrot.slane %v1506_v38, %v3680_v7  ;;  %v2177_v51 = vrot.slane %v1518_v32, %v3718_v15 }
 0x36a   :  { %v1419_v54 = vpop.permute.xlu1 %1418 }
 0x36b   :  { %v2014_v50 = vrot.slane %v1419_v54, %v3713_v39  ;;  %v2172_v54 = vrot.slane %v1515_v37, %v3713_v39 }
 0x36d   :  { %v2015_v11 = vsel %vm1615_vm14, %v2014_v50, %v2010_v24 }
 0x36e   :  { %v1509_v10 = vpop.permute.xlu1 %1508 }
 0x36f   :  { %v2162_v62 = vrot.slane %v1509_v10, %v3694_v57  ;;  %v2158_v57 = vsel %vm1594_vm11, %v2157_v63, %v2153_v33 }
 0x371   :  { %v2163_v6 = vsel %vm4166_vm7, %v2162_v62, %v2158_v57 }
 0x372   :  { %v1422_v1 = vpop.permute.xlu1 %1421 }
 0x373   :  { %v2019_v58 = vrot.slane %v1422_v1, %v3718_v15 }
 0x375   :  { %v2020_v30 = vsel %vm1622_vm15, %v2019_v58, %v2015_v11 }
 0x376   :  { %v2025_v19 = vsel %vm1629_vm0, %v2024_v41, %v2020_v30  ;;  %v1512_v17 = vpop.permute.xlu1 %1511 }
 0x377   :  { %v2193_v59 = vsel %vm2192_vm13, %v2025_v19, %v2191_v52  ;;  %v2167_v16 = vrot.slane %v1512_v17, %v3699_v44  ;;  %v2079_v52 = vsel %vm1594_vm11, %v2078_v5, %v2074_v56  ;;  %vm2196_vm11 = vcmask 1047559  }
 0x378   :  { %v2084_v55 = vsel %vm4165_vm6, %v2083_v49, %v2079_v52 }
 0x379   :  { %v2089_v27 = vsel %vm4167_vm8, %v2088_v2, %v2084_v55  ;;  %v2168_v44 = vsel %vm4168_vm9, %v2167_v16, %v2163_v6 }
 0x37a   :  { %v1470_v7 = vpop.permute.xlu1 %1469  ;;  %v2094_v0 = vsel %vm1615_vm14, %v2093_v20, %v2089_v27  ;;  %v2173_v31 = vsel %vm1615_vm14, %v2172_v54, %v2168_v44 }
 0x37b   :  { %v2098_v21 = vrot.slane %v1470_v7, %v3718_v15  ;;  %v2178_v39 = vsel %vm1622_vm15, %v2177_v51, %v2173_v31 }
 0x37d   :  { %v2099_v48 = vsel %vm1622_vm15, %v2098_v21, %v2094_v0 }
 0x37e   :  { %v1473_v38 = vpop.permute.xlu1 %1472 }
 0x37f   :  { %v2103_v40 = vrot.slane %v1473_v38, %v3731_v42 }
 0x381   :  { %v2104_v28 = vsel %vm1629_vm0, %v2103_v40, %v2099_v48 }
 0x382   :  { %v1521_v10 = vpop.permute.xlu1 %1520  ;;  %v2195_v22 = vsel %vm2194_vm10, %v2104_v28, %v2193_v59 }
 0x383   :  { %v2182_v23 = vrot.slane %v1521_v10, %v3731_v42 }
 0x385   :  { %v2183_v60 = vsel %vm1629_vm0, %v2182_v23, %v2178_v39 }
 0x386   :  { %v2197_v50 = vsel %vm2196_vm11, %v2183_v60, %v2195_v22 }
 0x387   :  { %v2199_v61 = vsel %vm1009_vm1, %v2197_v50, -inf }
 0x388   :  { %2200 = vmax.xlane.f32.xlu0 %v2199_v61 }
 0x415   :  { %v2201_v45 = vpop.xlane.xlu0 %2200 }
 0x416   :  { %v2202_v29 = vsub.f32 %v2199_v61, %v2201_v45 }
 0x418   :  { %v2203_v1 = vmul.f32 1.442695, %v2202_v29 }
 0x41a   :  { %2256 = vpow2.f32 %v2203_v1 }
 0x424   :  { %v2257_v25 = vpop.eup %2256 }
 0x425   :  { %2205 = vadd.xlane.f32.xlu1 %v2257_v25 }
 0x4b2   :  { %v2206_v15 = vpop.xlane.xlu1 %2205 }
 0x4b3   :  { %2258 = vrcp.f32 %v2206_v15 }
 0x4bd   :  { %v2259_v42 = vpop.eup %2258 }
 0x4be   :  { %v2208_v24 = vmul.f32 %v2259_v42, %v2257_v25 }
 0x4c0   :  { %2209 = vst [vmem:[#allocation2] sm:$0xff] %v2208_v24 }
 0x4c1   :  { %2271 = shalt.err (!%p2268_p4)
}
 0x4c2   :  { %s2272_s26 = scalar_lea.hbm %s4090_s4, 128 }
 0x4c3   :  { %p2273_p5 = scmp.ne.s32.totalorder %s4090_s4, %s2272_s26  ;;  %p2276_p6 = scmp.lt.u32.totalorder %s2272_s26, %s4090_s4 }
 0x4c5   :  { %p2278_p7 = pnand %p2276_p6, %p2273_p5 }
 0x4c7   :  { %2281 = shalt.err (!%p2278_p7)
}
 0x4c8   :  { %2219 = dma.vmem_to_hbm [thread:$0]  %s2217_s22, 128, %s4090_s4, [#allocation3]  }
 0x4c9   :  { %2282 = dma.done.wait [#allocation3], 128  }
 0x4ca   :  { %2283 = vsyncadd [#allocation3], 4294967168 }
 0x4cb   :  { %2223 = vsyncpa [#allocation3], 1 }

</bundles_post_ra>
